<compile_context>
chip_gen: v7x
topology: tpu7x:2x2x1
jax: 0.10.0
libtpu: 0.0.40
codegen_flags: <defaults>
</compile_context>

<pallas_src>
import jax
import jax.numpy as jnp
from jax.experimental import pallas as pl
from jax.experimental.pallas import tpu as pltpu


def embedding_net_kernel(users_ref, items_ref,       # scalar prefetch (SMEM)
                         uf_hbm, if_hbm,             # embedding tables (HBM)
                         w1u_ref, w1i_ref, b1_ref,   # linear1 (split) in VMEM
                         w2_ref, b2_ref,             # linear2 in VMEM
                         out_ref,                    # [TB, D_out] output tile
                         u_buf, i_buf, u_sem, i_sem):
    TB = u_buf.shape[0]
    base = pl.program_id(0) * TB

    # ---- DMA-gather TB embedding rows per table straight from HBM ----------
    # TB is small and static -> Python loop is fully unrolled.  All scalar SMEM
    # reads + DMA starts are issued before any wait so the copies overlap.
    u_copies = []
    i_copies = []
    for r in range(TB):
        u_idx = users_ref[base + r]
        i_idx = items_ref[base + r]
        cu = pltpu.make_async_copy(uf_hbm.at[pl.ds(u_idx, 1)],
                                   u_buf.at[pl.ds(r, 1)], u_sem.at[r])
        ci = pltpu.make_async_copy(if_hbm.at[pl.ds(i_idx, 1)],
                                   i_buf.at[pl.ds(r, 1)], i_sem.at[r])
        cu.start()
        ci.start()
        u_copies.append(cu)
        i_copies.append(ci)
    for r in range(TB):
        u_copies[r].wait()
        i_copies[r].wait()

    ue = u_buf[...]                                   # [TB, F]
    ie = i_buf[...]                                   # [TB, F]

    # ---- linear1 + ReLU (split-W1 form of concat([ue, ie], 1) @ W1) --------
    h1 = (jnp.dot(ue, w1u_ref[...], preferred_element_type=jnp.float32)
          + jnp.dot(ie, w1i_ref[...], preferred_element_type=jnp.float32)
          + b1_ref[...])
    h1 = jnp.maximum(h1, 0.0)

    # ---- linear2 ------------------------------------------------------------
    out = jnp.dot(h1, w2_ref[...], preferred_element_type=jnp.float32) + b2_ref[...]
    out_ref[...] = out.astype(out_ref.dtype)


def embedding_net_forward(users, items, params, *, tb=8):
    uf, itf, w1, b1, w2, b2 = params
    n_users, F = uf.shape
    n_items = itf.shape[0]
    H1 = w1.shape[1]
    D_out = w2.shape[1]
    B = users.shape[0]

    # Clamp indices (matches jnp gather semantics and keeps HBM DMAs in-bounds).
    users_i = jnp.clip(users.astype(jnp.int32), 0, n_users - 1)
    items_i = jnp.clip(items.astype(jnp.int32), 0, n_items - 1)

    # Pad batch up to a multiple of the batch tile.
    n_tiles = pl.cdiv(B, tb)
    B_pad = n_tiles * tb
    pad = B_pad - B
    if pad:
        users_i = jnp.concatenate([users_i, jnp.zeros((pad,), jnp.int32)])
        items_i = jnp.concatenate([items_i, jnp.zeros((pad,), jnp.int32)])

    # Split W1 so the concat is never materialized.
    w1u = w1[:F]
    w1i = w1[F:]
    b1_2d = b1.reshape(1, H1)
    b2_2d = b2.reshape(1, D_out)

    # Weights/biases: constant block index -> stay resident across grid steps.
    const = lambda shape: pl.BlockSpec(shape, lambda g, u, i: (0,) * len(shape))

    out = pl.pallas_call(
        embedding_net_kernel,
        out_shape=jax.ShapeDtypeStruct((B_pad, D_out), jnp.float32),
        grid_spec=pltpu.PrefetchScalarGridSpec(
            num_scalar_prefetch=2,                     # users, items -> SMEM
            grid=(n_tiles,),
            in_specs=[
                pl.BlockSpec(memory_space=pl.ANY),     # user_factors stay in HBM
                pl.BlockSpec(memory_space=pl.ANY),     # item_factors stay in HBM
                const((F, H1)),
                const((F, H1)),
                const((1, H1)),
                const((H1, D_out)),
                const((1, D_out)),
            ],
            out_specs=pl.BlockSpec((tb, D_out), lambda g, u, i: (g, 0)),
            scratch_shapes=[
                pltpu.VMEM((tb, F), jnp.float32),      # gathered user rows
                pltpu.VMEM((tb, F), jnp.float32),      # gathered item rows
                pltpu.SemaphoreType.DMA((tb,)),
                pltpu.SemaphoreType.DMA((tb,)),
            ],
        ),
        compiler_params=pltpu.CompilerParams(
            dimension_semantics=("parallel",)),        # both TCs on v7x
    )(users_i, items_i, uf, itf, w1u, w1i, b1_2d, w2, b2_2d)
    return out[:B]


def init_params(key, n_users, n_items, n_factors, H1, D_out):
    ks = jax.random.split(key, 6)
    uf = jax.random.normal(ks[0], (n_users, n_factors), jnp.float32)
    itf = jax.random.normal(ks[1], (n_items, n_factors), jnp.float32)
    # Linear weights stored as [in, out] (transposed relative to PyTorch).
    lim1 = 1.0 / jnp.sqrt(2 * n_factors)
    w1 = jax.random.uniform(ks[2], (2 * n_factors, H1), jnp.float32, -lim1, lim1)
    b1 = jax.random.uniform(ks[3], (H1,), jnp.float32, -lim1, lim1)
    lim2 = 1.0 / jnp.sqrt(H1)
    w2 = jax.random.uniform(ks[4], (H1, D_out), jnp.float32, -lim2, lim2)
    b2 = jax.random.uniform(ks[5], (D_out,), jnp.float32, -lim2, lim2)
    return (uf, itf, w1, b1, w2, b2)


def reference_forward(users, items, params):
    uf, itf, w1, b1, w2, b2 = params
    x = jnp.concatenate([uf[users], itf[items]], axis=1)
    h1 = jnp.maximum(x @ w1 + b1, 0.0)
    return h1 @ w2 + b2


if __name__ == "__main__":
    n_users, n_items, n_factors, H1, D_out = 16, 24, 32, 64, 8
    B = 16

    key = jax.random.PRNGKey(0)
    kp, ku, ki = jax.random.split(key, 3)
    params = init_params(kp, n_users, n_items, n_factors, H1, D_out)
    users = jax.random.randint(ku, (B,), 0, n_users, jnp.int32)
    items = jax.random.randint(ki, (B,), 0, n_items, jnp.int32)

    out = embedding_net_forward(users, items, params, tb=8)
    out = jax.block_until_ready(out)

    ref = reference_forward(users, items, params)
    assert out.shape == (B, D_out)
    assert jnp.allclose(out, ref, atol=1e-5, rtol=1e-5)
    print("KERNEL_OK")
</pallas_src>

<mosaic_0001>
module attributes {stable_mosaic.version = 11 : i64} {
  func.func @embedding_net_kernel(%arg0: i32, %arg1: memref<16xi32, #tpu.memory_space<smem>>, %arg2: memref<16xi32, #tpu.memory_space<smem>>, %arg3: memref<16x32xf32, #tpu.memory_space<any>>, %arg4: memref<24x32xf32, #tpu.memory_space<any>>, %arg5: memref<32x64xf32, #tpu.memory_space<vmem>>, %arg6: memref<32x64xf32, #tpu.memory_space<vmem>>, %arg7: memref<1x64xf32, #tpu.memory_space<vmem>>, %arg8: memref<64x8xf32, #tpu.memory_space<vmem>>, %arg9: memref<1x8xf32, #tpu.memory_space<vmem>>, %arg10: memref<8x8xf32, #tpu.memory_space<vmem>>, %arg11: memref<8x32xf32, #tpu.memory_space<vmem>>, %arg12: memref<8x32xf32, #tpu.memory_space<vmem>>, %arg13: memref<8x!tpu.dma_semaphore, #tpu.memory_space<semaphore_mem>>, %arg14: memref<8x!tpu.dma_semaphore, #tpu.memory_space<semaphore_mem>>) attributes {dimension_semantics = [#tpu.dimension_semantics<parallel>], iteration_bounds = array<i64: 2>, scalar_prefetch = 2 : i64, scratch_operands = 4 : i64, tpu.core_type = #tpu.core_type<tc>, window_params = [{}, {}, {pipeline_mode = #tpu.pipeline_mode<synchronous>, transform_indices = @transform_2, window_bounds = array<i64: 32, 64>}, {pipeline_mode = #tpu.pipeline_mode<synchronous>, transform_indices = @transform_3, window_bounds = array<i64: 32, 64>}, {pipeline_mode = #tpu.pipeline_mode<synchronous>, transform_indices = @transform_4, window_bounds = array<i64: 1, 64>}, {pipeline_mode = #tpu.pipeline_mode<synchronous>, transform_indices = @transform_5, window_bounds = array<i64: 64, 8>}, {pipeline_mode = #tpu.pipeline_mode<synchronous>, transform_indices = @transform_6, window_bounds = array<i64: 1, 8>}, {transform_indices = @transform_7, window_bounds = array<i64: 8, 8>}]} {
    %c8_i32 = arith.constant 8 : i32
    %0 = arith.muli %arg0, %c8_i32 : i32
    %c0_i32 = arith.constant 0 : i32
    %1 = arith.addi %0, %c0_i32 : i32
    %2 = arith.index_cast %1 : i32 to index
    %3 = memref.load %arg1[%2] : memref<16xi32, #tpu.memory_space<smem>>
    %c0_i32_0 = arith.constant 0 : i32
    %4 = arith.addi %0, %c0_i32_0 : i32
    %5 = arith.index_cast %4 : i32 to index
    %6 = memref.load %arg2[%5] : memref<16xi32, #tpu.memory_space<smem>>
    %c0_i32_1 = arith.constant 0 : i32
    %c0_i32_2 = arith.constant 0 : i32
    %7 = tpu.memref_slice %arg3[%3, %c0_i32_2] : memref<16x32xf32, #tpu.memory_space<any>> -> memref<1x32xf32, #tpu.memory_space<any>>
    %c0_i32_3 = arith.constant 0 : i32
    %c0_i32_4 = arith.constant 0 : i32
    %8 = tpu.memref_slice %arg11[%c0_i32_3, %c0_i32_4] : memref<8x32xf32, #tpu.memory_space<vmem>> -> memref<1x32xf32, #tpu.memory_space<vmem>>
    %9 = tpu.memref_slice %arg13[%c0_i32_1] : memref<8x!tpu.dma_semaphore, #tpu.memory_space<semaphore_mem>> -> memref<1x!tpu.dma_semaphore, #tpu.memory_space<semaphore_mem>>
    %10 = tpu.memref_squeeze %9 : memref<1x!tpu.dma_semaphore, #tpu.memory_space<semaphore_mem>> -> memref<!tpu.dma_semaphore, #tpu.memory_space<semaphore_mem>>
    tpu.enqueue_dma source(%7 : memref<1x32xf32, #tpu.memory_space<any>>) target(%8 : memref<1x32xf32, #tpu.memory_space<vmem>>) target_semaphore(%10 : memref<!tpu.dma_semaphore, #tpu.memory_space<semaphore_mem>>)
    %c0_i32_5 = arith.constant 0 : i32
    %c0_i32_6 = arith.constant 0 : i32
    %11 = tpu.memref_slice %arg4[%6, %c0_i32_6] : memref<24x32xf32, #tpu.memory_space<any>> -> memref<1x32xf32, #tpu.memory_space<any>>
    %c0_i32_7 = arith.constant 0 : i32
    %c0_i32_8 = arith.constant 0 : i32
    %12 = tpu.memref_slice %arg12[%c0_i32_7, %c0_i32_8] : memref<8x32xf32, #tpu.memory_space<vmem>> -> memref<1x32xf32, #tpu.memory_space<vmem>>
    %13 = tpu.memref_slice %arg14[%c0_i32_5] : memref<8x!tpu.dma_semaphore, #tpu.memory_space<semaphore_mem>> -> memref<1x!tpu.dma_semaphore, #tpu.memory_space<semaphore_mem>>
    %14 = tpu.memref_squeeze %13 : memref<1x!tpu.dma_semaphore, #tpu.memory_space<semaphore_mem>> -> memref<!tpu.dma_semaphore, #tpu.memory_space<semaphore_mem>>
    tpu.enqueue_dma source(%11 : memref<1x32xf32, #tpu.memory_space<any>>) target(%12 : memref<1x32xf32, #tpu.memory_space<vmem>>) target_semaphore(%14 : memref<!tpu.dma_semaphore, #tpu.memory_space<semaphore_mem>>)
    %c1_i32 = arith.constant 1 : i32
    %15 = arith.addi %0, %c1_i32 : i32
    %16 = arith.index_cast %15 : i32 to index
    %17 = memref.load %arg1[%16] : memref<16xi32, #tpu.memory_space<smem>>
    %c1_i32_9 = arith.constant 1 : i32
    %18 = arith.addi %0, %c1_i32_9 : i32
    %19 = arith.index_cast %18 : i32 to index
    %20 = memref.load %arg2[%19] : memref<16xi32, #tpu.memory_space<smem>>
    %c1_i32_10 = arith.constant 1 : i32
    %c0_i32_11 = arith.constant 0 : i32
    %21 = tpu.memref_slice %arg3[%17, %c0_i32_11] : memref<16x32xf32, #tpu.memory_space<any>> -> memref<1x32xf32, #tpu.memory_space<any>>
    %c1_i32_12 = arith.constant 1 : i32
    %c0_i32_13 = arith.constant 0 : i32
    %22 = tpu.memref_slice %arg11[%c1_i32_12, %c0_i32_13] : memref<8x32xf32, #tpu.memory_space<vmem>> -> memref<1x32xf32, #tpu.memory_space<vmem>>
    %23 = tpu.memref_slice %arg13[%c1_i32_10] : memref<8x!tpu.dma_semaphore, #tpu.memory_space<semaphore_mem>> -> memref<1x!tpu.dma_semaphore, #tpu.memory_space<semaphore_mem>>
    %24 = tpu.memref_squeeze %23 : memref<1x!tpu.dma_semaphore, #tpu.memory_space<semaphore_mem>> -> memref<!tpu.dma_semaphore, #tpu.memory_space<semaphore_mem>>
    tpu.enqueue_dma source(%21 : memref<1x32xf32, #tpu.memory_space<any>>) target(%22 : memref<1x32xf32, #tpu.memory_space<vmem>>) target_semaphore(%24 : memref<!tpu.dma_semaphore, #tpu.memory_space<semaphore_mem>>)
    %c1_i32_14 = arith.constant 1 : i32
    %c0_i32_15 = arith.constant 0 : i32
    %25 = tpu.memref_slice %arg4[%20, %c0_i32_15] : memref<24x32xf32, #tpu.memory_space<any>> -> memref<1x32xf32, #tpu.memory_space<any>>
    %c1_i32_16 = arith.constant 1 : i32
    %c0_i32_17 = arith.constant 0 : i32
    %26 = tpu.memref_slice %arg12[%c1_i32_16, %c0_i32_17] : memref<8x32xf32, #tpu.memory_space<vmem>> -> memref<1x32xf32, #tpu.memory_space<vmem>>
    %27 = tpu.memref_slice %arg14[%c1_i32_14] : memref<8x!tpu.dma_semaphore, #tpu.memory_space<semaphore_mem>> -> memref<1x!tpu.dma_semaphore, #tpu.memory_space<semaphore_mem>>
    %28 = tpu.memref_squeeze %27 : memref<1x!tpu.dma_semaphore, #tpu.memory_space<semaphore_mem>> -> memref<!tpu.dma_semaphore, #tpu.memory_space<semaphore_mem>>
    tpu.enqueue_dma source(%25 : memref<1x32xf32, #tpu.memory_space<any>>) target(%26 : memref<1x32xf32, #tpu.memory_space<vmem>>) target_semaphore(%28 : memref<!tpu.dma_semaphore, #tpu.memory_space<semaphore_mem>>)
    %c2_i32 = arith.constant 2 : i32
    %29 = arith.addi %0, %c2_i32 : i32
    %30 = arith.index_cast %29 : i32 to index
    %31 = memref.load %arg1[%30] : memref<16xi32, #tpu.memory_space<smem>>
    %c2_i32_18 = arith.constant 2 : i32
    %32 = arith.addi %0, %c2_i32_18 : i32
    %33 = arith.index_cast %32 : i32 to index
    %34 = memref.load %arg2[%33] : memref<16xi32, #tpu.memory_space<smem>>
    %c2_i32_19 = arith.constant 2 : i32
    %c0_i32_20 = arith.constant 0 : i32
    %35 = tpu.memref_slice %arg3[%31, %c0_i32_20] : memref<16x32xf32, #tpu.memory_space<any>> -> memref<1x32xf32, #tpu.memory_space<any>>
    %c2_i32_21 = arith.constant 2 : i32
    %c0_i32_22 = arith.constant 0 : i32
    %36 = tpu.memref_slice %arg11[%c2_i32_21, %c0_i32_22] : memref<8x32xf32, #tpu.memory_space<vmem>> -> memref<1x32xf32, #tpu.memory_space<vmem>>
    %37 = tpu.memref_slice %arg13[%c2_i32_19] : memref<8x!tpu.dma_semaphore, #tpu.memory_space<semaphore_mem>> -> memref<1x!tpu.dma_semaphore, #tpu.memory_space<semaphore_mem>>
    %38 = tpu.memref_squeeze %37 : memref<1x!tpu.dma_semaphore, #tpu.memory_space<semaphore_mem>> -> memref<!tpu.dma_semaphore, #tpu.memory_space<semaphore_mem>>
    tpu.enqueue_dma source(%35 : memref<1x32xf32, #tpu.memory_space<any>>) target(%36 : memref<1x32xf32, #tpu.memory_space<vmem>>) target_semaphore(%38 : memref<!tpu.dma_semaphore, #tpu.memory_space<semaphore_mem>>)
    %c2_i32_23 = arith.constant 2 : i32
    %c0_i32_24 = arith.constant 0 : i32
    %39 = tpu.memref_slice %arg4[%34, %c0_i32_24] : memref<24x32xf32, #tpu.memory_space<any>> -> memref<1x32xf32, #tpu.memory_space<any>>
    %c2_i32_25 = arith.constant 2 : i32
    %c0_i32_26 = arith.constant 0 : i32
    %40 = tpu.memref_slice %arg12[%c2_i32_25, %c0_i32_26] : memref<8x32xf32, #tpu.memory_space<vmem>> -> memref<1x32xf32, #tpu.memory_space<vmem>>
    %41 = tpu.memref_slice %arg14[%c2_i32_23] : memref<8x!tpu.dma_semaphore, #tpu.memory_space<semaphore_mem>> -> memref<1x!tpu.dma_semaphore, #tpu.memory_space<semaphore_mem>>
    %42 = tpu.memref_squeeze %41 : memref<1x!tpu.dma_semaphore, #tpu.memory_space<semaphore_mem>> -> memref<!tpu.dma_semaphore, #tpu.memory_space<semaphore_mem>>
    tpu.enqueue_dma source(%39 : memref<1x32xf32, #tpu.memory_space<any>>) target(%40 : memref<1x32xf32, #tpu.memory_space<vmem>>) target_semaphore(%42 : memref<!tpu.dma_semaphore, #tpu.memory_space<semaphore_mem>>)
    %c3_i32 = arith.constant 3 : i32
    %43 = arith.addi %0, %c3_i32 : i32
    %44 = arith.index_cast %43 : i32 to index
    %45 = memref.load %arg1[%44] : memref<16xi32, #tpu.memory_space<smem>>
    %c3_i32_27 = arith.constant 3 : i32
    %46 = arith.addi %0, %c3_i32_27 : i32
    %47 = arith.index_cast %46 : i32 to index
    %48 = memref.load %arg2[%47] : memref<16xi32, #tpu.memory_space<smem>>
    %c3_i32_28 = arith.constant 3 : i32
    %c0_i32_29 = arith.constant 0 : i32
    %49 = tpu.memref_slice %arg3[%45, %c0_i32_29] : memref<16x32xf32, #tpu.memory_space<any>> -> memref<1x32xf32, #tpu.memory_space<any>>
    %c3_i32_30 = arith.constant 3 : i32
    %c0_i32_31 = arith.constant 0 : i32
    %50 = tpu.memref_slice %arg11[%c3_i32_30, %c0_i32_31] : memref<8x32xf32, #tpu.memory_space<vmem>> -> memref<1x32xf32, #tpu.memory_space<vmem>>
    %51 = tpu.memref_slice %arg13[%c3_i32_28] : memref<8x!tpu.dma_semaphore, #tpu.memory_space<semaphore_mem>> -> memref<1x!tpu.dma_semaphore, #tpu.memory_space<semaphore_mem>>
    %52 = tpu.memref_squeeze %51 : memref<1x!tpu.dma_semaphore, #tpu.memory_space<semaphore_mem>> -> memref<!tpu.dma_semaphore, #tpu.memory_space<semaphore_mem>>
    tpu.enqueue_dma source(%49 : memref<1x32xf32, #tpu.memory_space<any>>) target(%50 : memref<1x32xf32, #tpu.memory_space<vmem>>) target_semaphore(%52 : memref<!tpu.dma_semaphore, #tpu.memory_space<semaphore_mem>>)
    %c3_i32_32 = arith.constant 3 : i32
    %c0_i32_33 = arith.constant 0 : i32
    %53 = tpu.memref_slice %arg4[%48, %c0_i32_33] : memref<24x32xf32, #tpu.memory_space<any>> -> memref<1x32xf32, #tpu.memory_space<any>>
    %c3_i32_34 = arith.constant 3 : i32
    %c0_i32_35 = arith.constant 0 : i32
    %54 = tpu.memref_slice %arg12[%c3_i32_34, %c0_i32_35] : memref<8x32xf32, #tpu.memory_space<vmem>> -> memref<1x32xf32, #tpu.memory_space<vmem>>
    %55 = tpu.memref_slice %arg14[%c3_i32_32] : memref<8x!tpu.dma_semaphore, #tpu.memory_space<semaphore_mem>> -> memref<1x!tpu.dma_semaphore, #tpu.memory_space<semaphore_mem>>
    %56 = tpu.memref_squeeze %55 : memref<1x!tpu.dma_semaphore, #tpu.memory_space<semaphore_mem>> -> memref<!tpu.dma_semaphore, #tpu.memory_space<semaphore_mem>>
    tpu.enqueue_dma source(%53 : memref<1x32xf32, #tpu.memory_space<any>>) target(%54 : memref<1x32xf32, #tpu.memory_space<vmem>>) target_semaphore(%56 : memref<!tpu.dma_semaphore, #tpu.memory_space<semaphore_mem>>)
    %c4_i32 = arith.constant 4 : i32
    %57 = arith.addi %0, %c4_i32 : i32
    %58 = arith.index_cast %57 : i32 to index
    %59 = memref.load %arg1[%58] : memref<16xi32, #tpu.memory_space<smem>>
    %c4_i32_36 = arith.constant 4 : i32
    %60 = arith.addi %0, %c4_i32_36 : i32
    %61 = arith.index_cast %60 : i32 to index
    %62 = memref.load %arg2[%61] : memref<16xi32, #tpu.memory_space<smem>>
    %c4_i32_37 = arith.constant 4 : i32
    %c0_i32_38 = arith.constant 0 : i32
    %63 = tpu.memref_slice %arg3[%59, %c0_i32_38] : memref<16x32xf32, #tpu.memory_space<any>> -> memref<1x32xf32, #tpu.memory_space<any>>
    %c4_i32_39 = arith.constant 4 : i32
    %c0_i32_40 = arith.constant 0 : i32
    %64 = tpu.memref_slice %arg11[%c4_i32_39, %c0_i32_40] : memref<8x32xf32, #tpu.memory_space<vmem>> -> memref<1x32xf32, #tpu.memory_space<vmem>>
    %65 = tpu.memref_slice %arg13[%c4_i32_37] : memref<8x!tpu.dma_semaphore, #tpu.memory_space<semaphore_mem>> -> memref<1x!tpu.dma_semaphore, #tpu.memory_space<semaphore_mem>>
    %66 = tpu.memref_squeeze %65 : memref<1x!tpu.dma_semaphore, #tpu.memory_space<semaphore_mem>> -> memref<!tpu.dma_semaphore, #tpu.memory_space<semaphore_mem>>
    tpu.enqueue_dma source(%63 : memref<1x32xf32, #tpu.memory_space<any>>) target(%64 : memref<1x32xf32, #tpu.memory_space<vmem>>) target_semaphore(%66 : memref<!tpu.dma_semaphore, #tpu.memory_space<semaphore_mem>>)
    %c4_i32_41 = arith.constant 4 : i32
    %c0_i32_42 = arith.constant 0 : i32
    %67 = tpu.memref_slice %arg4[%62, %c0_i32_42] : memref<24x32xf32, #tpu.memory_space<any>> -> memref<1x32xf32, #tpu.memory_space<any>>
    %c4_i32_43 = arith.constant 4 : i32
    %c0_i32_44 = arith.constant 0 : i32
    %68 = tpu.memref_slice %arg12[%c4_i32_43, %c0_i32_44] : memref<8x32xf32, #tpu.memory_space<vmem>> -> memref<1x32xf32, #tpu.memory_space<vmem>>
    %69 = tpu.memref_slice %arg14[%c4_i32_41] : memref<8x!tpu.dma_semaphore, #tpu.memory_space<semaphore_mem>> -> memref<1x!tpu.dma_semaphore, #tpu.memory_space<semaphore_mem>>
    %70 = tpu.memref_squeeze %69 : memref<1x!tpu.dma_semaphore, #tpu.memory_space<semaphore_mem>> -> memref<!tpu.dma_semaphore, #tpu.memory_space<semaphore_mem>>
    tpu.enqueue_dma source(%67 : memref<1x32xf32, #tpu.memory_space<any>>) target(%68 : memref<1x32xf32, #tpu.memory_space<vmem>>) target_semaphore(%70 : memref<!tpu.dma_semaphore, #tpu.memory_space<semaphore_mem>>)
    %c5_i32 = arith.constant 5 : i32
    %71 = arith.addi %0, %c5_i32 : i32
    %72 = arith.index_cast %71 : i32 to index
    %73 = memref.load %arg1[%72] : memref<16xi32, #tpu.memory_space<smem>>
    %c5_i32_45 = arith.constant 5 : i32
    %74 = arith.addi %0, %c5_i32_45 : i32
    %75 = arith.index_cast %74 : i32 to index
    %76 = memref.load %arg2[%75] : memref<16xi32, #tpu.memory_space<smem>>
    %c5_i32_46 = arith.constant 5 : i32
    %c0_i32_47 = arith.constant 0 : i32
    %77 = tpu.memref_slice %arg3[%73, %c0_i32_47] : memref<16x32xf32, #tpu.memory_space<any>> -> memref<1x32xf32, #tpu.memory_space<any>>
    %c5_i32_48 = arith.constant 5 : i32
    %c0_i32_49 = arith.constant 0 : i32
    %78 = tpu.memref_slice %arg11[%c5_i32_48, %c0_i32_49] : memref<8x32xf32, #tpu.memory_space<vmem>> -> memref<1x32xf32, #tpu.memory_space<vmem>>
    %79 = tpu.memref_slice %arg13[%c5_i32_46] : memref<8x!tpu.dma_semaphore, #tpu.memory_space<semaphore_mem>> -> memref<1x!tpu.dma_semaphore, #tpu.memory_space<semaphore_mem>>
    %80 = tpu.memref_squeeze %79 : memref<1x!tpu.dma_semaphore, #tpu.memory_space<semaphore_mem>> -> memref<!tpu.dma_semaphore, #tpu.memory_space<semaphore_mem>>
    tpu.enqueue_dma source(%77 : memref<1x32xf32, #tpu.memory_space<any>>) target(%78 : memref<1x32xf32, #tpu.memory_space<vmem>>) target_semaphore(%80 : memref<!tpu.dma_semaphore, #tpu.memory_space<semaphore_mem>>)
    %c5_i32_50 = arith.constant 5 : i32
    %c0_i32_51 = arith.constant 0 : i32
    %81 = tpu.memref_slice %arg4[%76, %c0_i32_51] : memref<24x32xf32, #tpu.memory_space<any>> -> memref<1x32xf32, #tpu.memory_space<any>>
    %c5_i32_52 = arith.constant 5 : i32
    %c0_i32_53 = arith.constant 0 : i32
    %82 = tpu.memref_slice %arg12[%c5_i32_52, %c0_i32_53] : memref<8x32xf32, #tpu.memory_space<vmem>> -> memref<1x32xf32, #tpu.memory_space<vmem>>
    %83 = tpu.memref_slice %arg14[%c5_i32_50] : memref<8x!tpu.dma_semaphore, #tpu.memory_space<semaphore_mem>> -> memref<1x!tpu.dma_semaphore, #tpu.memory_space<semaphore_mem>>
    %84 = tpu.memref_squeeze %83 : memref<1x!tpu.dma_semaphore, #tpu.memory_space<semaphore_mem>> -> memref<!tpu.dma_semaphore, #tpu.memory_space<semaphore_mem>>
    tpu.enqueue_dma source(%81 : memref<1x32xf32, #tpu.memory_space<any>>) target(%82 : memref<1x32xf32, #tpu.memory_space<vmem>>) target_semaphore(%84 : memref<!tpu.dma_semaphore, #tpu.memory_space<semaphore_mem>>)
    %c6_i32 = arith.constant 6 : i32
    %85 = arith.addi %0, %c6_i32 : i32
    %86 = arith.index_cast %85 : i32 to index
    %87 = memref.load %arg1[%86] : memref<16xi32, #tpu.memory_space<smem>>
    %c6_i32_54 = arith.constant 6 : i32
    %88 = arith.addi %0, %c6_i32_54 : i32
    %89 = arith.index_cast %88 : i32 to index
    %90 = memref.load %arg2[%89] : memref<16xi32, #tpu.memory_space<smem>>
    %c6_i32_55 = arith.constant 6 : i32
    %c0_i32_56 = arith.constant 0 : i32
    %91 = tpu.memref_slice %arg3[%87, %c0_i32_56] : memref<16x32xf32, #tpu.memory_space<any>> -> memref<1x32xf32, #tpu.memory_space<any>>
    %c6_i32_57 = arith.constant 6 : i32
    %c0_i32_58 = arith.constant 0 : i32
    %92 = tpu.memref_slice %arg11[%c6_i32_57, %c0_i32_58] : memref<8x32xf32, #tpu.memory_space<vmem>> -> memref<1x32xf32, #tpu.memory_space<vmem>>
    %93 = tpu.memref_slice %arg13[%c6_i32_55] : memref<8x!tpu.dma_semaphore, #tpu.memory_space<semaphore_mem>> -> memref<1x!tpu.dma_semaphore, #tpu.memory_space<semaphore_mem>>
    %94 = tpu.memref_squeeze %93 : memref<1x!tpu.dma_semaphore, #tpu.memory_space<semaphore_mem>> -> memref<!tpu.dma_semaphore, #tpu.memory_space<semaphore_mem>>
    tpu.enqueue_dma source(%91 : memref<1x32xf32, #tpu.memory_space<any>>) target(%92 : memref<1x32xf32, #tpu.memory_space<vmem>>) target_semaphore(%94 : memref<!tpu.dma_semaphore, #tpu.memory_space<semaphore_mem>>)
    %c6_i32_59 = arith.constant 6 : i32
    %c0_i32_60 = arith.constant 0 : i32
    %95 = tpu.memref_slice %arg4[%90, %c0_i32_60] : memref<24x32xf32, #tpu.memory_space<any>> -> memref<1x32xf32, #tpu.memory_space<any>>
    %c6_i32_61 = arith.constant 6 : i32
    %c0_i32_62 = arith.constant 0 : i32
    %96 = tpu.memref_slice %arg12[%c6_i32_61, %c0_i32_62] : memref<8x32xf32, #tpu.memory_space<vmem>> -> memref<1x32xf32, #tpu.memory_space<vmem>>
    %97 = tpu.memref_slice %arg14[%c6_i32_59] : memref<8x!tpu.dma_semaphore, #tpu.memory_space<semaphore_mem>> -> memref<1x!tpu.dma_semaphore, #tpu.memory_space<semaphore_mem>>
    %98 = tpu.memref_squeeze %97 : memref<1x!tpu.dma_semaphore, #tpu.memory_space<semaphore_mem>> -> memref<!tpu.dma_semaphore, #tpu.memory_space<semaphore_mem>>
    tpu.enqueue_dma source(%95 : memref<1x32xf32, #tpu.memory_space<any>>) target(%96 : memref<1x32xf32, #tpu.memory_space<vmem>>) target_semaphore(%98 : memref<!tpu.dma_semaphore, #tpu.memory_space<semaphore_mem>>)
    %c7_i32 = arith.constant 7 : i32
    %99 = arith.addi %0, %c7_i32 : i32
    %100 = arith.index_cast %99 : i32 to index
    %101 = memref.load %arg1[%100] : memref<16xi32, #tpu.memory_space<smem>>
    %c7_i32_63 = arith.constant 7 : i32
    %102 = arith.addi %0, %c7_i32_63 : i32
    %103 = arith.index_cast %102 : i32 to index
    %104 = memref.load %arg2[%103] : memref<16xi32, #tpu.memory_space<smem>>
    %c7_i32_64 = arith.constant 7 : i32
    %c0_i32_65 = arith.constant 0 : i32
    %105 = tpu.memref_slice %arg3[%101, %c0_i32_65] : memref<16x32xf32, #tpu.memory_space<any>> -> memref<1x32xf32, #tpu.memory_space<any>>
    %c7_i32_66 = arith.constant 7 : i32
    %c0_i32_67 = arith.constant 0 : i32
    %106 = tpu.memref_slice %arg11[%c7_i32_66, %c0_i32_67] : memref<8x32xf32, #tpu.memory_space<vmem>> -> memref<1x32xf32, #tpu.memory_space<vmem>>
    %107 = tpu.memref_slice %arg13[%c7_i32_64] : memref<8x!tpu.dma_semaphore, #tpu.memory_space<semaphore_mem>> -> memref<1x!tpu.dma_semaphore, #tpu.memory_space<semaphore_mem>>
    %108 = tpu.memref_squeeze %107 : memref<1x!tpu.dma_semaphore, #tpu.memory_space<semaphore_mem>> -> memref<!tpu.dma_semaphore, #tpu.memory_space<semaphore_mem>>
    tpu.enqueue_dma source(%105 : memref<1x32xf32, #tpu.memory_space<any>>) target(%106 : memref<1x32xf32, #tpu.memory_space<vmem>>) target_semaphore(%108 : memref<!tpu.dma_semaphore, #tpu.memory_space<semaphore_mem>>)
    %c7_i32_68 = arith.constant 7 : i32
    %c0_i32_69 = arith.constant 0 : i32
    %109 = tpu.memref_slice %arg4[%104, %c0_i32_69] : memref<24x32xf32, #tpu.memory_space<any>> -> memref<1x32xf32, #tpu.memory_space<any>>
    %c7_i32_70 = arith.constant 7 : i32
    %c0_i32_71 = arith.constant 0 : i32
    %110 = tpu.memref_slice %arg12[%c7_i32_70, %c0_i32_71] : memref<8x32xf32, #tpu.memory_space<vmem>> -> memref<1x32xf32, #tpu.memory_space<vmem>>
    %111 = tpu.memref_slice %arg14[%c7_i32_68] : memref<8x!tpu.dma_semaphore, #tpu.memory_space<semaphore_mem>> -> memref<1x!tpu.dma_semaphore, #tpu.memory_space<semaphore_mem>>
    %112 = tpu.memref_squeeze %111 : memref<1x!tpu.dma_semaphore, #tpu.memory_space<semaphore_mem>> -> memref<!tpu.dma_semaphore, #tpu.memory_space<semaphore_mem>>
    tpu.enqueue_dma source(%109 : memref<1x32xf32, #tpu.memory_space<any>>) target(%110 : memref<1x32xf32, #tpu.memory_space<vmem>>) target_semaphore(%112 : memref<!tpu.dma_semaphore, #tpu.memory_space<semaphore_mem>>)
    %c0_i32_72 = arith.constant 0 : i32
    %c0_i32_73 = arith.constant 0 : i32
    %113 = tpu.memref_slice %arg3[%3, %c0_i32_73] : memref<16x32xf32, #tpu.memory_space<any>> -> memref<1x32xf32, #tpu.memory_space<any>>
    %c0_i32_74 = arith.constant 0 : i32
    %c0_i32_75 = arith.constant 0 : i32
    %114 = tpu.memref_slice %arg11[%c0_i32_74, %c0_i32_75] : memref<8x32xf32, #tpu.memory_space<vmem>> -> memref<1x32xf32, #tpu.memory_space<vmem>>
    %115 = tpu.memref_slice %arg13[%c0_i32_72] : memref<8x!tpu.dma_semaphore, #tpu.memory_space<semaphore_mem>> -> memref<1x!tpu.dma_semaphore, #tpu.memory_space<semaphore_mem>>
    %116 = tpu.memref_squeeze %115 : memref<1x!tpu.dma_semaphore, #tpu.memory_space<semaphore_mem>> -> memref<!tpu.dma_semaphore, #tpu.memory_space<semaphore_mem>>
    tpu.wait_dma2 semaphore(%116 : memref<!tpu.dma_semaphore, #tpu.memory_space<semaphore_mem>>) src(%113 : memref<1x32xf32, #tpu.memory_space<any>>) dst(%114 : memref<1x32xf32, #tpu.memory_space<vmem>>)
    %c0_i32_76 = arith.constant 0 : i32
    %c0_i32_77 = arith.constant 0 : i32
    %117 = tpu.memref_slice %arg4[%6, %c0_i32_77] : memref<24x32xf32, #tpu.memory_space<any>> -> memref<1x32xf32, #tpu.memory_space<any>>
    %c0_i32_78 = arith.constant 0 : i32
    %c0_i32_79 = arith.constant 0 : i32
    %118 = tpu.memref_slice %arg12[%c0_i32_78, %c0_i32_79] : memref<8x32xf32, #tpu.memory_space<vmem>> -> memref<1x32xf32, #tpu.memory_space<vmem>>
    %119 = tpu.memref_slice %arg14[%c0_i32_76] : memref<8x!tpu.dma_semaphore, #tpu.memory_space<semaphore_mem>> -> memref<1x!tpu.dma_semaphore, #tpu.memory_space<semaphore_mem>>
    %120 = tpu.memref_squeeze %119 : memref<1x!tpu.dma_semaphore, #tpu.memory_space<semaphore_mem>> -> memref<!tpu.dma_semaphore, #tpu.memory_space<semaphore_mem>>
    tpu.wait_dma2 semaphore(%120 : memref<!tpu.dma_semaphore, #tpu.memory_space<semaphore_mem>>) src(%117 : memref<1x32xf32, #tpu.memory_space<any>>) dst(%118 : memref<1x32xf32, #tpu.memory_space<vmem>>)
    %c1_i32_80 = arith.constant 1 : i32
    %c0_i32_81 = arith.constant 0 : i32
    %121 = tpu.memref_slice %arg3[%17, %c0_i32_81] : memref<16x32xf32, #tpu.memory_space<any>> -> memref<1x32xf32, #tpu.memory_space<any>>
    %c1_i32_82 = arith.constant 1 : i32
    %c0_i32_83 = arith.constant 0 : i32
    %122 = tpu.memref_slice %arg11[%c1_i32_82, %c0_i32_83] : memref<8x32xf32, #tpu.memory_space<vmem>> -> memref<1x32xf32, #tpu.memory_space<vmem>>
    %123 = tpu.memref_slice %arg13[%c1_i32_80] : memref<8x!tpu.dma_semaphore, #tpu.memory_space<semaphore_mem>> -> memref<1x!tpu.dma_semaphore, #tpu.memory_space<semaphore_mem>>
    %124 = tpu.memref_squeeze %123 : memref<1x!tpu.dma_semaphore, #tpu.memory_space<semaphore_mem>> -> memref<!tpu.dma_semaphore, #tpu.memory_space<semaphore_mem>>
    tpu.wait_dma2 semaphore(%124 : memref<!tpu.dma_semaphore, #tpu.memory_space<semaphore_mem>>) src(%121 : memref<1x32xf32, #tpu.memory_space<any>>) dst(%122 : memref<1x32xf32, #tpu.memory_space<vmem>>)
    %c1_i32_84 = arith.constant 1 : i32
    %c0_i32_85 = arith.constant 0 : i32
    %125 = tpu.memref_slice %arg4[%20, %c0_i32_85] : memref<24x32xf32, #tpu.memory_space<any>> -> memref<1x32xf32, #tpu.memory_space<any>>
    %c1_i32_86 = arith.constant 1 : i32
    %c0_i32_87 = arith.constant 0 : i32
    %126 = tpu.memref_slice %arg12[%c1_i32_86, %c0_i32_87] : memref<8x32xf32, #tpu.memory_space<vmem>> -> memref<1x32xf32, #tpu.memory_space<vmem>>
    %127 = tpu.memref_slice %arg14[%c1_i32_84] : memref<8x!tpu.dma_semaphore, #tpu.memory_space<semaphore_mem>> -> memref<1x!tpu.dma_semaphore, #tpu.memory_space<semaphore_mem>>
    %128 = tpu.memref_squeeze %127 : memref<1x!tpu.dma_semaphore, #tpu.memory_space<semaphore_mem>> -> memref<!tpu.dma_semaphore, #tpu.memory_space<semaphore_mem>>
    tpu.wait_dma2 semaphore(%128 : memref<!tpu.dma_semaphore, #tpu.memory_space<semaphore_mem>>) src(%125 : memref<1x32xf32, #tpu.memory_space<any>>) dst(%126 : memref<1x32xf32, #tpu.memory_space<vmem>>)
    %c2_i32_88 = arith.constant 2 : i32
    %c0_i32_89 = arith.constant 0 : i32
    %129 = tpu.memref_slice %arg3[%31, %c0_i32_89] : memref<16x32xf32, #tpu.memory_space<any>> -> memref<1x32xf32, #tpu.memory_space<any>>
    %c2_i32_90 = arith.constant 2 : i32
    %c0_i32_91 = arith.constant 0 : i32
    %130 = tpu.memref_slice %arg11[%c2_i32_90, %c0_i32_91] : memref<8x32xf32, #tpu.memory_space<vmem>> -> memref<1x32xf32, #tpu.memory_space<vmem>>
    %131 = tpu.memref_slice %arg13[%c2_i32_88] : memref<8x!tpu.dma_semaphore, #tpu.memory_space<semaphore_mem>> -> memref<1x!tpu.dma_semaphore, #tpu.memory_space<semaphore_mem>>
    %132 = tpu.memref_squeeze %131 : memref<1x!tpu.dma_semaphore, #tpu.memory_space<semaphore_mem>> -> memref<!tpu.dma_semaphore, #tpu.memory_space<semaphore_mem>>
    tpu.wait_dma2 semaphore(%132 : memref<!tpu.dma_semaphore, #tpu.memory_space<semaphore_mem>>) src(%129 : memref<1x32xf32, #tpu.memory_space<any>>) dst(%130 : memref<1x32xf32, #tpu.memory_space<vmem>>)
    %c2_i32_92 = arith.constant 2 : i32
    %c0_i32_93 = arith.constant 0 : i32
    %133 = tpu.memref_slice %arg4[%34, %c0_i32_93] : memref<24x32xf32, #tpu.memory_space<any>> -> memref<1x32xf32, #tpu.memory_space<any>>
    %c2_i32_94 = arith.constant 2 : i32
    %c0_i32_95 = arith.constant 0 : i32
    %134 = tpu.memref_slice %arg12[%c2_i32_94, %c0_i32_95] : memref<8x32xf32, #tpu.memory_space<vmem>> -> memref<1x32xf32, #tpu.memory_space<vmem>>
    %135 = tpu.memref_slice %arg14[%c2_i32_92] : memref<8x!tpu.dma_semaphore, #tpu.memory_space<semaphore_mem>> -> memref<1x!tpu.dma_semaphore, #tpu.memory_space<semaphore_mem>>
    %136 = tpu.memref_squeeze %135 : memref<1x!tpu.dma_semaphore, #tpu.memory_space<semaphore_mem>> -> memref<!tpu.dma_semaphore, #tpu.memory_space<semaphore_mem>>
    tpu.wait_dma2 semaphore(%136 : memref<!tpu.dma_semaphore, #tpu.memory_space<semaphore_mem>>) src(%133 : memref<1x32xf32, #tpu.memory_space<any>>) dst(%134 : memref<1x32xf32, #tpu.memory_space<vmem>>)
    %c3_i32_96 = arith.constant 3 : i32
    %c0_i32_97 = arith.constant 0 : i32
    %137 = tpu.memref_slice %arg3[%45, %c0_i32_97] : memref<16x32xf32, #tpu.memory_space<any>> -> memref<1x32xf32, #tpu.memory_space<any>>
    %c3_i32_98 = arith.constant 3 : i32
    %c0_i32_99 = arith.constant 0 : i32
    %138 = tpu.memref_slice %arg11[%c3_i32_98, %c0_i32_99] : memref<8x32xf32, #tpu.memory_space<vmem>> -> memref<1x32xf32, #tpu.memory_space<vmem>>
    %139 = tpu.memref_slice %arg13[%c3_i32_96] : memref<8x!tpu.dma_semaphore, #tpu.memory_space<semaphore_mem>> -> memref<1x!tpu.dma_semaphore, #tpu.memory_space<semaphore_mem>>
    %140 = tpu.memref_squeeze %139 : memref<1x!tpu.dma_semaphore, #tpu.memory_space<semaphore_mem>> -> memref<!tpu.dma_semaphore, #tpu.memory_space<semaphore_mem>>
    tpu.wait_dma2 semaphore(%140 : memref<!tpu.dma_semaphore, #tpu.memory_space<semaphore_mem>>) src(%137 : memref<1x32xf32, #tpu.memory_space<any>>) dst(%138 : memref<1x32xf32, #tpu.memory_space<vmem>>)
    %c3_i32_100 = arith.constant 3 : i32
    %c0_i32_101 = arith.constant 0 : i32
    %141 = tpu.memref_slice %arg4[%48, %c0_i32_101] : memref<24x32xf32, #tpu.memory_space<any>> -> memref<1x32xf32, #tpu.memory_space<any>>
    %c3_i32_102 = arith.constant 3 : i32
    %c0_i32_103 = arith.constant 0 : i32
    %142 = tpu.memref_slice %arg12[%c3_i32_102, %c0_i32_103] : memref<8x32xf32, #tpu.memory_space<vmem>> -> memref<1x32xf32, #tpu.memory_space<vmem>>
    %143 = tpu.memref_slice %arg14[%c3_i32_100] : memref<8x!tpu.dma_semaphore, #tpu.memory_space<semaphore_mem>> -> memref<1x!tpu.dma_semaphore, #tpu.memory_space<semaphore_mem>>
    %144 = tpu.memref_squeeze %143 : memref<1x!tpu.dma_semaphore, #tpu.memory_space<semaphore_mem>> -> memref<!tpu.dma_semaphore, #tpu.memory_space<semaphore_mem>>
    tpu.wait_dma2 semaphore(%144 : memref<!tpu.dma_semaphore, #tpu.memory_space<semaphore_mem>>) src(%141 : memref<1x32xf32, #tpu.memory_space<any>>) dst(%142 : memref<1x32xf32, #tpu.memory_space<vmem>>)
    %c4_i32_104 = arith.constant 4 : i32
    %c0_i32_105 = arith.constant 0 : i32
    %145 = tpu.memref_slice %arg3[%59, %c0_i32_105] : memref<16x32xf32, #tpu.memory_space<any>> -> memref<1x32xf32, #tpu.memory_space<any>>
    %c4_i32_106 = arith.constant 4 : i32
    %c0_i32_107 = arith.constant 0 : i32
    %146 = tpu.memref_slice %arg11[%c4_i32_106, %c0_i32_107] : memref<8x32xf32, #tpu.memory_space<vmem>> -> memref<1x32xf32, #tpu.memory_space<vmem>>
    %147 = tpu.memref_slice %arg13[%c4_i32_104] : memref<8x!tpu.dma_semaphore, #tpu.memory_space<semaphore_mem>> -> memref<1x!tpu.dma_semaphore, #tpu.memory_space<semaphore_mem>>
    %148 = tpu.memref_squeeze %147 : memref<1x!tpu.dma_semaphore, #tpu.memory_space<semaphore_mem>> -> memref<!tpu.dma_semaphore, #tpu.memory_space<semaphore_mem>>
    tpu.wait_dma2 semaphore(%148 : memref<!tpu.dma_semaphore, #tpu.memory_space<semaphore_mem>>) src(%145 : memref<1x32xf32, #tpu.memory_space<any>>) dst(%146 : memref<1x32xf32, #tpu.memory_space<vmem>>)
    %c4_i32_108 = arith.constant 4 : i32
    %c0_i32_109 = arith.constant 0 : i32
    %149 = tpu.memref_slice %arg4[%62, %c0_i32_109] : memref<24x32xf32, #tpu.memory_space<any>> -> memref<1x32xf32, #tpu.memory_space<any>>
    %c4_i32_110 = arith.constant 4 : i32
    %c0_i32_111 = arith.constant 0 : i32
    %150 = tpu.memref_slice %arg12[%c4_i32_110, %c0_i32_111] : memref<8x32xf32, #tpu.memory_space<vmem>> -> memref<1x32xf32, #tpu.memory_space<vmem>>
    %151 = tpu.memref_slice %arg14[%c4_i32_108] : memref<8x!tpu.dma_semaphore, #tpu.memory_space<semaphore_mem>> -> memref<1x!tpu.dma_semaphore, #tpu.memory_space<semaphore_mem>>
    %152 = tpu.memref_squeeze %151 : memref<1x!tpu.dma_semaphore, #tpu.memory_space<semaphore_mem>> -> memref<!tpu.dma_semaphore, #tpu.memory_space<semaphore_mem>>
    tpu.wait_dma2 semaphore(%152 : memref<!tpu.dma_semaphore, #tpu.memory_space<semaphore_mem>>) src(%149 : memref<1x32xf32, #tpu.memory_space<any>>) dst(%150 : memref<1x32xf32, #tpu.memory_space<vmem>>)
    %c5_i32_112 = arith.constant 5 : i32
    %c0_i32_113 = arith.constant 0 : i32
    %153 = tpu.memref_slice %arg3[%73, %c0_i32_113] : memref<16x32xf32, #tpu.memory_space<any>> -> memref<1x32xf32, #tpu.memory_space<any>>
    %c5_i32_114 = arith.constant 5 : i32
    %c0_i32_115 = arith.constant 0 : i32
    %154 = tpu.memref_slice %arg11[%c5_i32_114, %c0_i32_115] : memref<8x32xf32, #tpu.memory_space<vmem>> -> memref<1x32xf32, #tpu.memory_space<vmem>>
    %155 = tpu.memref_slice %arg13[%c5_i32_112] : memref<8x!tpu.dma_semaphore, #tpu.memory_space<semaphore_mem>> -> memref<1x!tpu.dma_semaphore, #tpu.memory_space<semaphore_mem>>
    %156 = tpu.memref_squeeze %155 : memref<1x!tpu.dma_semaphore, #tpu.memory_space<semaphore_mem>> -> memref<!tpu.dma_semaphore, #tpu.memory_space<semaphore_mem>>
    tpu.wait_dma2 semaphore(%156 : memref<!tpu.dma_semaphore, #tpu.memory_space<semaphore_mem>>) src(%153 : memref<1x32xf32, #tpu.memory_space<any>>) dst(%154 : memref<1x32xf32, #tpu.memory_space<vmem>>)
    %c5_i32_116 = arith.constant 5 : i32
    %c0_i32_117 = arith.constant 0 : i32
    %157 = tpu.memref_slice %arg4[%76, %c0_i32_117] : memref<24x32xf32, #tpu.memory_space<any>> -> memref<1x32xf32, #tpu.memory_space<any>>
    %c5_i32_118 = arith.constant 5 : i32
    %c0_i32_119 = arith.constant 0 : i32
    %158 = tpu.memref_slice %arg12[%c5_i32_118, %c0_i32_119] : memref<8x32xf32, #tpu.memory_space<vmem>> -> memref<1x32xf32, #tpu.memory_space<vmem>>
    %159 = tpu.memref_slice %arg14[%c5_i32_116] : memref<8x!tpu.dma_semaphore, #tpu.memory_space<semaphore_mem>> -> memref<1x!tpu.dma_semaphore, #tpu.memory_space<semaphore_mem>>
    %160 = tpu.memref_squeeze %159 : memref<1x!tpu.dma_semaphore, #tpu.memory_space<semaphore_mem>> -> memref<!tpu.dma_semaphore, #tpu.memory_space<semaphore_mem>>
    tpu.wait_dma2 semaphore(%160 : memref<!tpu.dma_semaphore, #tpu.memory_space<semaphore_mem>>) src(%157 : memref<1x32xf32, #tpu.memory_space<any>>) dst(%158 : memref<1x32xf32, #tpu.memory_space<vmem>>)
    %c6_i32_120 = arith.constant 6 : i32
    %c0_i32_121 = arith.constant 0 : i32
    %161 = tpu.memref_slice %arg3[%87, %c0_i32_121] : memref<16x32xf32, #tpu.memory_space<any>> -> memref<1x32xf32, #tpu.memory_space<any>>
    %c6_i32_122 = arith.constant 6 : i32
    %c0_i32_123 = arith.constant 0 : i32
    %162 = tpu.memref_slice %arg11[%c6_i32_122, %c0_i32_123] : memref<8x32xf32, #tpu.memory_space<vmem>> -> memref<1x32xf32, #tpu.memory_space<vmem>>
    %163 = tpu.memref_slice %arg13[%c6_i32_120] : memref<8x!tpu.dma_semaphore, #tpu.memory_space<semaphore_mem>> -> memref<1x!tpu.dma_semaphore, #tpu.memory_space<semaphore_mem>>
    %164 = tpu.memref_squeeze %163 : memref<1x!tpu.dma_semaphore, #tpu.memory_space<semaphore_mem>> -> memref<!tpu.dma_semaphore, #tpu.memory_space<semaphore_mem>>
    tpu.wait_dma2 semaphore(%164 : memref<!tpu.dma_semaphore, #tpu.memory_space<semaphore_mem>>) src(%161 : memref<1x32xf32, #tpu.memory_space<any>>) dst(%162 : memref<1x32xf32, #tpu.memory_space<vmem>>)
    %c6_i32_124 = arith.constant 6 : i32
    %c0_i32_125 = arith.constant 0 : i32
    %165 = tpu.memref_slice %arg4[%90, %c0_i32_125] : memref<24x32xf32, #tpu.memory_space<any>> -> memref<1x32xf32, #tpu.memory_space<any>>
    %c6_i32_126 = arith.constant 6 : i32
    %c0_i32_127 = arith.constant 0 : i32
    %166 = tpu.memref_slice %arg12[%c6_i32_126, %c0_i32_127] : memref<8x32xf32, #tpu.memory_space<vmem>> -> memref<1x32xf32, #tpu.memory_space<vmem>>
    %167 = tpu.memref_slice %arg14[%c6_i32_124] : memref<8x!tpu.dma_semaphore, #tpu.memory_space<semaphore_mem>> -> memref<1x!tpu.dma_semaphore, #tpu.memory_space<semaphore_mem>>
    %168 = tpu.memref_squeeze %167 : memref<1x!tpu.dma_semaphore, #tpu.memory_space<semaphore_mem>> -> memref<!tpu.dma_semaphore, #tpu.memory_space<semaphore_mem>>
    tpu.wait_dma2 semaphore(%168 : memref<!tpu.dma_semaphore, #tpu.memory_space<semaphore_mem>>) src(%165 : memref<1x32xf32, #tpu.memory_space<any>>) dst(%166 : memref<1x32xf32, #tpu.memory_space<vmem>>)
    %c7_i32_128 = arith.constant 7 : i32
    %c0_i32_129 = arith.constant 0 : i32
    %169 = tpu.memref_slice %arg3[%101, %c0_i32_129] : memref<16x32xf32, #tpu.memory_space<any>> -> memref<1x32xf32, #tpu.memory_space<any>>
    %c7_i32_130 = arith.constant 7 : i32
    %c0_i32_131 = arith.constant 0 : i32
    %170 = tpu.memref_slice %arg11[%c7_i32_130, %c0_i32_131] : memref<8x32xf32, #tpu.memory_space<vmem>> -> memref<1x32xf32, #tpu.memory_space<vmem>>
    %171 = tpu.memref_slice %arg13[%c7_i32_128] : memref<8x!tpu.dma_semaphore, #tpu.memory_space<semaphore_mem>> -> memref<1x!tpu.dma_semaphore, #tpu.memory_space<semaphore_mem>>
    %172 = tpu.memref_squeeze %171 : memref<1x!tpu.dma_semaphore, #tpu.memory_space<semaphore_mem>> -> memref<!tpu.dma_semaphore, #tpu.memory_space<semaphore_mem>>
    tpu.wait_dma2 semaphore(%172 : memref<!tpu.dma_semaphore, #tpu.memory_space<semaphore_mem>>) src(%169 : memref<1x32xf32, #tpu.memory_space<any>>) dst(%170 : memref<1x32xf32, #tpu.memory_space<vmem>>)
    %c7_i32_132 = arith.constant 7 : i32
    %c0_i32_133 = arith.constant 0 : i32
    %173 = tpu.memref_slice %arg4[%104, %c0_i32_133] : memref<24x32xf32, #tpu.memory_space<any>> -> memref<1x32xf32, #tpu.memory_space<any>>
    %c7_i32_134 = arith.constant 7 : i32
    %c0_i32_135 = arith.constant 0 : i32
    %174 = tpu.memref_slice %arg12[%c7_i32_134, %c0_i32_135] : memref<8x32xf32, #tpu.memory_space<vmem>> -> memref<1x32xf32, #tpu.memory_space<vmem>>
    %175 = tpu.memref_slice %arg14[%c7_i32_132] : memref<8x!tpu.dma_semaphore, #tpu.memory_space<semaphore_mem>> -> memref<1x!tpu.dma_semaphore, #tpu.memory_space<semaphore_mem>>
    %176 = tpu.memref_squeeze %175 : memref<1x!tpu.dma_semaphore, #tpu.memory_space<semaphore_mem>> -> memref<!tpu.dma_semaphore, #tpu.memory_space<semaphore_mem>>
    tpu.wait_dma2 semaphore(%176 : memref<!tpu.dma_semaphore, #tpu.memory_space<semaphore_mem>>) src(%173 : memref<1x32xf32, #tpu.memory_space<any>>) dst(%174 : memref<1x32xf32, #tpu.memory_space<vmem>>)
    %c0 = arith.constant 0 : index
    %c0_136 = arith.constant 0 : index
    %177 = vector.load %arg11[%c0, %c0_136] : memref<8x32xf32, #tpu.memory_space<vmem>>, vector<8x32xf32>
    %c0_137 = arith.constant 0 : index
    %c0_138 = arith.constant 0 : index
    %178 = vector.load %arg12[%c0_137, %c0_138] : memref<8x32xf32, #tpu.memory_space<vmem>>, vector<8x32xf32>
    %c0_139 = arith.constant 0 : index
    %c0_140 = arith.constant 0 : index
    %179 = vector.load %arg5[%c0_139, %c0_140] : memref<32x64xf32, #tpu.memory_space<vmem>>, vector<32x64xf32>
    %cst = arith.constant dense<0.000000e+00> : vector<8x64xf32>
    %180 = tpu.matmul %177, %179, %cst {dimension_numbers = #tpu.dot_dimension_numbers<[1], [0], [0], [1], [0, 0, 1, 1], [], []>} : vector<8x32xf32>, vector<32x64xf32>, vector<8x64xf32> -> vector<8x64xf32>
    %c0_141 = arith.constant 0 : index
    %c0_142 = arith.constant 0 : index
    %181 = vector.load %arg6[%c0_141, %c0_142] : memref<32x64xf32, #tpu.memory_space<vmem>>, vector<32x64xf32>
    %cst_143 = arith.constant dense<0.000000e+00> : vector<8x64xf32>
    %182 = tpu.matmul %178, %181, %cst_143 {dimension_numbers = #tpu.dot_dimension_numbers<[1], [0], [0], [1], [0, 0, 1, 1], [], []>} : vector<8x32xf32>, vector<32x64xf32>, vector<8x64xf32> -> vector<8x64xf32>
    %183 = arith.addf %180, %182 : vector<8x64xf32>
    %c0_144 = arith.constant 0 : index
    %c0_145 = arith.constant 0 : index
    %184 = vector.load %arg7[%c0_144, %c0_145] : memref<1x64xf32, #tpu.memory_space<vmem>>, vector<1x64xf32>
    %185 = vector.broadcast %184 : vector<1x64xf32> to vector<8x64xf32>
    %186 = arith.addf %183, %185 : vector<8x64xf32>
    %cst_146 = arith.constant 0.000000e+00 : f32
    %187 = vector.broadcast %cst_146 : f32 to vector<8x64xf32>
    %188 = arith.maximumf %186, %187 : vector<8x64xf32>
    %c0_147 = arith.constant 0 : index
    %c0_148 = arith.constant 0 : index
    %189 = vector.load %arg8[%c0_147, %c0_148] : memref<64x8xf32, #tpu.memory_space<vmem>>, vector<64x8xf32>
    %cst_149 = arith.constant dense<0.000000e+00> : vector<8x8xf32>
    %190 = tpu.matmul %188, %189, %cst_149 {dimension_numbers = #tpu.dot_dimension_numbers<[1], [0], [0], [1], [0, 0, 1, 1], [], []>} : vector<8x64xf32>, vector<64x8xf32>, vector<8x8xf32> -> vector<8x8xf32>
    %c0_150 = arith.constant 0 : index
    %c0_151 = arith.constant 0 : index
    %191 = vector.load %arg9[%c0_150, %c0_151] : memref<1x8xf32, #tpu.memory_space<vmem>>, vector<1x8xf32>
    %192 = vector.broadcast %191 : vector<1x8xf32> to vector<8x8xf32>
    %193 = arith.addf %190, %192 : vector<8x8xf32>
    %c0_152 = arith.constant 0 : index
    %c0_153 = arith.constant 0 : index
    %194 = vector.load %arg10[%c0_152, %c0_153] : memref<8x8xf32, #tpu.memory_space<vmem>>, vector<8x8xf32>
    tpu.vector_store %arg10[%c0_152, %c0_153], %193 {strides = array<i32>} : memref<8x8xf32, #tpu.memory_space<vmem>>, vector<8x8xf32>,
    return
  }
  func.func @transform_2(%arg0: i32, %arg1: memref<16xi32, #tpu.memory_space<smem>>, %arg2: memref<16xi32, #tpu.memory_space<smem>>) -> (i32, i32) {
    %c0_i32 = arith.constant 0 : i32
    %c0_i32_0 = arith.constant 0 : i32
    %c0_i32_1 = arith.constant 0 : i32
    return %c0_i32, %c0_i32_0 : i32, i32
  }
  func.func @transform_3(%arg0: i32, %arg1: memref<16xi32, #tpu.memory_space<smem>>, %arg2: memref<16xi32, #tpu.memory_space<smem>>) -> (i32, i32) {
    %c0_i32 = arith.constant 0 : i32
    %c0_i32_0 = arith.constant 0 : i32
    %c0_i32_1 = arith.constant 0 : i32
    return %c0_i32, %c0_i32_0 : i32, i32
  }
  func.func @transform_4(%arg0: i32, %arg1: memref<16xi32, #tpu.memory_space<smem>>, %arg2: memref<16xi32, #tpu.memory_space<smem>>) -> (i32, i32) {
    %c0_i32 = arith.constant 0 : i32
    %c0_i32_0 = arith.constant 0 : i32
    %c0_i32_1 = arith.constant 0 : i32
    return %c0_i32, %c0_i32_0 : i32, i32
  }
  func.func @transform_5(%arg0: i32, %arg1: memref<16xi32, #tpu.memory_space<smem>>, %arg2: memref<16xi32, #tpu.memory_space<smem>>) -> (i32, i32) {
    %c0_i32 = arith.constant 0 : i32
    %c0_i32_0 = arith.constant 0 : i32
    %c0_i32_1 = arith.constant 0 : i32
    return %c0_i32, %c0_i32_0 : i32, i32
  }
  func.func @transform_6(%arg0: i32, %arg1: memref<16xi32, #tpu.memory_space<smem>>, %arg2: memref<16xi32, #tpu.memory_space<smem>>) -> (i32, i32) {
    %c0_i32 = arith.constant 0 : i32
    %c0_i32_0 = arith.constant 0 : i32
    %c0_i32_1 = arith.constant 0 : i32
    return %c0_i32, %c0_i32_0 : i32, i32
  }
  func.func @transform_7(%arg0: i32, %arg1: memref<16xi32, #tpu.memory_space<smem>>, %arg2: memref<16xi32, #tpu.memory_space<smem>>) -> (i32, i32) {
    %c0_i32 = arith.constant 0 : i32
    %c0_i32_0 = arith.constant 0 : i32
    return %arg0, %c0_i32 : i32, i32
  }
}

</mosaic_0001>

<bundles_post_ra>
// kernel: tpu_custom_call.1
= control target key start
LH: loop header
LB: loop body
LE: loop exit
PB: predicated region body
PF: predicated region fallthrough
CT: control target
= control target key end

     0   :  { %s1979_s0 = inlined_call_operand.vmem [shape: s32[16], index: 0, kind: input, shape index: {}]   ;;  %s1980_s2 = inlined_call_operand.hbm [shape: f32[16,32], index: 2, kind: input, shape index: {}]   ;;  %s1981_s3 = inlined_call_operand.hbm [shape: f32[24,32], index: 3, kind: input, shape index: {}]   ;;  %s1982_s4 = inlined_call_operand.vmem [shape: f32[32,64], index: 4, kind: input, shape index: {}]   ;;  %s1983_s5 = inlined_call_operand.vmem [shape: f32[32,64], index: 5, kind: input, shape index: {}]   ;;  %s1984_s6 = inlined_call_operand.vmem [shape: f32[1,64], index: 6, kind: input, shape index: {}]   ;;  %s1985_s7 = inlined_call_operand.vmem [shape: f32[64,8], index: 7, kind: input, shape index: {}]   ;;  %s1986_s8 = inlined_call_operand.vmem [shape: f32[1,8], index: 8, kind: input, shape index: {}]   ;;  %s1987_s9 = inlined_call_operand.vmem [shape: f32[16,8], index: 9, kind: output, shape index: {}]   ;;  %s1988_s1 = inlined_call_operand.vmem [shape: s32[16], index: 1, kind: input, shape index: {}]  }
   0x1   :  { %1990 = sst [smem:[#allocation61_spill]] %s1984_s6  ;;  %s14_s11 = sshll.u32 %s1979_s0, 4  ;;  %s15_s11 = int_to_ptr.vmem [resolvable:$true] %s14_s11 }
   0x2   :  { %1991 = sst [smem:[#allocation62_spill]] %s1986_s8  ;;  %s18_s14 = sshll.u32 %s1988_s1, 4  ;;  %s19_s14 = int_to_ptr.vmem [resolvable:$true] %s18_s14 }
   0x3   :  { %1992 = sst [smem:[#allocation63_spill]] %s1987_s9  ;;  %s1108_s15 = scalar_lea.vmem %s15_s11, 16 }
   0x4   :  { %p1109_p0 = scmp.ne.s32.totalorder %s15_s11, %s1108_s15  ;;  %p1113_p1 = scmp.lt.s32.totalorder %s15_s11, %s15_s11 }
   0x5   :  { %p1114_p2 = scmp.lt.s32.totalorder %s1108_s15, %s1108_s15 }
   0x7   :  { %p1115_p3 = por %p1114_p2, %p1113_p1 }
   0x9   :  { %p1116_p4 = pnand %p1115_p3, %p1109_p0 }
   0xb   :  { %1119 = shalt.err (!%p1116_p4)  }
   0xc   :  { %s1558_s16 = smov [#allocation7]   ;;  %s1120_s17 = scalar_lea.vmem %s19_s14, 16 }
   0xd   :  { %17 = dma.vmem_to_smem %s15_s11, 16, %s1558_s16, [#allocation6] }
   0xe   :  { %p1121_p5 = scmp.ne.s32.totalorder %s19_s14, %s1120_s17  ;;  %p1125_p6 = scmp.lt.s32.totalorder %s19_s14, %s19_s14 }
   0xf   :  { %p1126_p7 = scmp.lt.s32.totalorder %s1120_s17, %s1120_s17 }
  0x11   :  { %p1127_p8 = por %p1126_p7, %p1125_p6 }
  0x13   :  { %p1128_p9 = pnand %p1127_p8, %p1121_p5 }
  0x15   :  { %1131 = shalt.err (!%p1128_p9)  }
  0x16   :  { %s1559_s0 = smov [#allocation8]  }
  0x17   :  { %21 = dma.vmem_to_smem %s19_s14, 16, %s1559_s0, [#allocation6] }
  0x18   :  { %1520 = dma.done.wait [#allocation6], 32 }
  0x19   :  { %1521 = vsyncadd [#allocation6], 4294967264 }
  0x1a   :  { %23 = sfence }
  0x1b   :  { %s1635_s1 = smov 0  }
  0x1c LB: > { %1993 = sst [smem:[#allocation60_spill]] %s1556_s1  ;;  %s950_s18 = sadd.s32 4294967295, %s1556_s1   ;;  %s1556_s1 = sphi %s1635_s1, %s29_s1  }
  0x1d   : > { %p953_p10 = scmp.ge.s32.totalorder %s1556_s1, 1  ;;  %p191_p11 = scmp.lt.s32.totalorder %s1556_s1, 3 }
  0x1f   : > { %p192_p12 = pnand %p953_p10, %p191_p11 }
  0x20   : > { %p213_p13 = scmp.lt.s32.totalorder (!%p192_p12), %s950_s18, 1  ;;  %s1643_s19 = sshll.u32 (!%p192_p12), %s950_s18, 3 }
  0x21   : > { %195 = sbr.rel (%p192_p12) target bundleno = 876 (0x36c), region = 40  ;;  %s218_s20 = sld [smem:[#allocation7 + %s1643_s19]] (!%p192_p12) }
  0x22   : > { %s1560_s21 = smov (!%p192_p12), [#allocation2]   ;;  %s1647_s23 = sld [smem:[#allocation8 + %s1643_s19]] (!%p192_p12) }
  0x23   : > { %s229_s22 = sshll.u32 (!%p192_p12), %s1560_s21, 4  ;;  %s1994_s9 = sld [smem:[#allocation63_spill]] (!%p192_p12)  ;;  %s1649_s22 = int_to_ptr.vmem [resolvable:$true] %s229_s22 }
  0x24   : > { %s1561_s28 = smov (!%p192_p12), [#allocation3]   ;;  %s246_s30 = sadd.s32 (!%p192_p12), 1, %s1643_s19 }
  0x25   : > { %s242_s29 = sshll.u32 (!%p192_p12), %s1561_s28, 4  ;;  %s1664_s14 = sld [smem:[#allocation7 + %s246_s30]] (!%p192_p12)  ;;  %s1657_s29 = int_to_ptr.vmem [resolvable:$true] %s242_s29 }
  0x26   : > { %s1669_s0 = scalar_lea.hbm (!%p192_p12), %s1980_s2, 256 }
  0x27   : > { %s956_s10 = sshll.u32 (!%p192_p12), %s218_s20, 4 }
  0x28   : > { %s1999_s18 = smov (!%p213_p13, %s950_s18), 1  ;;  %s221_s13 = scalar_lea.hbm %s1980_s2, %s956_s10 }
  0x29   : > { %s954_s24 = sshll.u32 %s1999_s18, 3  ;;  %s1132_s15 = scalar_lea.hbm %s221_s13, 16 }
  0x2a   : > { %s1654_s27 = scalar_lea.vmem %s1994_s9, %s954_s24  ;;  %p1133_p0 = scmp.ne.s32.totalorder %s221_s13, %s1132_s15 }
  0x2b   : > { %p1135_p1 = scmp.lt.u32.totalorder %s221_s13, %s1980_s2  ;;  %p1136_p2 = scmp.lt.u32.totalorder %s1669_s0, %s1132_s15 }
  0x2c   : > { %p1138_p4 = scmp.lt.u32.totalorder %s1132_s15, %s221_s13 }
  0x2d   : > { %p1137_p3 = por %p1136_p2, %p1135_p1 }
  0x2f   : > { %p1139_p5 = por %p1138_p4, %p1137_p3 }
  0x31   : > { %p1140_p6 = pnand %p1139_p5, %p1133_p0 }
  0x33   : > { %1143 = shalt.err (!%p1140_p6)  }
  0x34   : > { %s1144_s20 = scalar_lea.vmem %s1649_s22, 16  ;;  %s1678_s24 = scalar_lea.vmem %s1649_s22, 128 }
  0x35   : > { %p1145_p7 = scmp.ne.s32.totalorder %s1649_s22, %s1144_s20  ;;  %p1149_p8 = scmp.lt.s32.totalorder %s1649_s22, %s1649_s22 }
  0x36   : > { %p1150_p9 = scmp.lt.s32.totalorder %s1678_s24, %s1144_s20 }
  0x38   : > { %p1151_p10 = por %p1150_p9, %p1149_p8 }
  0x3a   : > { %p1152_p11 = pnand %p1151_p10, %p1145_p7 }
  0x3c   : > { %1155 = shalt.err (!%p1152_p11)  }
  0x3d   : > { %232 = dma.hbm_to_vmem [thread:$0]  %s221_s13, 16, %s1649_s22, [#allocation4] }
  0x3e   : > { %s957_s25 = sshll.u32 %s1647_s23, 4  ;;  %s1562_s11 = smov [#allocation2 + $0x1]  }
  0x3f   : > { %s234_s10 = scalar_lea.hbm %s1981_s3, %s957_s25  ;;  %s260_s12 = sshll.u32 %s1562_s11, 4  ;;  %s261_s12 = int_to_ptr.vmem [resolvable:$true] %s260_s12 }
  0x40   : > { %s1156_s15 = scalar_lea.hbm %s234_s10, 16  ;;  %s1691_s18 = scalar_lea.hbm %s1981_s3, 384 }
  0x41   : > { %p1157_p12 = scmp.ne.s32.totalorder %s234_s10, %s1156_s15  ;;  %p1159_p13 = scmp.lt.u32.totalorder %s234_s10, %s1981_s3 }
  0x42   : > { %p1160_p0 = scmp.lt.u32.totalorder %s1691_s18, %s1156_s15  ;;  %p1162_p2 = scmp.lt.u32.totalorder %s1156_s15, %s234_s10 }
  0x44   : > { %p1161_p1 = por %p1160_p0, %p1159_p13 }
  0x46   : > { %p1163_p3 = por %p1162_p2, %p1161_p1 }
  0x48   : > { %p1164_p4 = pnand %p1163_p3, %p1157_p12 }
  0x4a   : > { %1167 = shalt.err (!%p1164_p4)  }
  0x4b   : > { %s1168_s23 = scalar_lea.vmem %s1657_s29, 16  ;;  %s1700_s13 = scalar_lea.vmem %s1657_s29, 128 }
  0x4c   : > { %p1169_p5 = scmp.ne.s32.totalorder %s1657_s29, %s1168_s23  ;;  %p1173_p6 = scmp.lt.s32.totalorder %s1657_s29, %s1657_s29 }
  0x4d   : > { %p1174_p7 = scmp.lt.s32.totalorder %s1700_s13, %s1168_s23 }
  0x4f   : > { %p1175_p8 = por %p1174_p7, %p1173_p6 }
  0x51   : > { %p1176_p9 = pnand %p1175_p8, %p1169_p5 }
  0x53   : > { %1179 = shalt.err (!%p1176_p9)  }
  0x54   : > { %245 = dma.hbm_to_vmem [thread:$0]  %s234_s10, 16, %s1657_s29, [#allocation5] }
  0x55   : > { %s1708_s25 = sld [smem:[#allocation8 + %s246_s30]]  ;;  %s958_s26 = sshll.u32 %s1664_s14, 4 }
  0x56   : > { %s250_s15 = scalar_lea.hbm %s1980_s2, %s958_s26  ;;  %s1563_s16 = smov [#allocation3 + $0x1]  }
  0x57   : > { %s275_s17 = sshll.u32 %s1563_s16, 4  ;;  %s1180_s21 = scalar_lea.hbm %s250_s15, 16  ;;  %s276_s17 = int_to_ptr.vmem [resolvable:$true] %s275_s17 }
  0x58   : > { %p1181_p10 = scmp.ne.s32.totalorder %s250_s15, %s1180_s21  ;;  %p1183_p11 = scmp.lt.u32.totalorder %s250_s15, %s1980_s2 }
  0x59   : > { %p1184_p12 = scmp.lt.u32.totalorder %s1669_s0, %s1180_s21  ;;  %p1186_p0 = scmp.lt.u32.totalorder %s1180_s21, %s250_s15 }
  0x5b   : > { %p1185_p13 = por %p1184_p12, %p1183_p11 }
  0x5d   : > { %p1187_p1 = por %p1186_p0, %p1185_p13 }
  0x5f   : > { %p1188_p2 = pnand %p1187_p1, %p1181_p10 }
  0x61   : > { %1191 = shalt.err (!%p1188_p2)  }
  0x62   : > { %s1192_s30 = scalar_lea.vmem %s261_s12, 16  ;;  %p1197_p4 = scmp.lt.s32.totalorder %s261_s12, %s1649_s22 }
  0x63   : > { %p1193_p3 = scmp.ne.s32.totalorder %s261_s12, %s1192_s30  ;;  %p1198_p5 = scmp.lt.s32.totalorder %s1678_s24, %s1192_s30 }
  0x65   : > { %p1199_p6 = por %p1198_p5, %p1197_p4 }
  0x67   : > { %p1200_p7 = pnand %p1199_p6, %p1193_p3 }
  0x69   : > { %1203 = shalt.err (!%p1200_p7)  }
  0x6a   : > { %263 = dma.hbm_to_vmem [thread:$0]  %s250_s15, 16, %s261_s12, [#allocation4 + $0x1] }
  0x6b   : > { %s279_s14 = sadd.s32 2, %s1643_s19  ;;  %s959_s26 = sshll.u32 %s1708_s25, 4 }
  0x6c   : > { %s1721_s10 = sld [smem:[#allocation7 + %s279_s14]]  ;;  %s1564_s28 = smov [#allocation2 + $0x2]  }
  0x6d   : > { %s293_s11 = sshll.u32 %s1564_s28, 4  ;;  %s265_s20 = scalar_lea.hbm %s1981_s3, %s959_s26  ;;  %s1727_s11 = int_to_ptr.vmem [resolvable:$true] %s293_s11 }
  0x6e   : > { %s1204_s23 = scalar_lea.hbm %s265_s20, 16  ;;  %p1207_p9 = scmp.lt.u32.totalorder %s265_s20, %s1981_s3 }
  0x6f   : > { %p1205_p8 = scmp.ne.s32.totalorder %s265_s20, %s1204_s23  ;;  %p1208_p10 = scmp.lt.u32.totalorder %s1691_s18, %s1204_s23 }
  0x70   : > { %p1210_p12 = scmp.lt.u32.totalorder %s1204_s23, %s265_s20 }
  0x71   : > { %p1209_p11 = por %p1208_p10, %p1207_p9 }
  0x73   : > { %p1211_p13 = por %p1210_p12, %p1209_p11 }
  0x75   : > { %p1212_p0 = pnand %p1211_p13, %p1205_p8 }
  0x77   : > { %1215 = shalt.err (!%p1212_p0)  }
  0x78   : > { %s1216_s25 = scalar_lea.vmem %s276_s17, 16  ;;  %p1221_p2 = scmp.lt.s32.totalorder %s276_s17, %s1657_s29 }
  0x79   : > { %p1217_p1 = scmp.ne.s32.totalorder %s276_s17, %s1216_s25  ;;  %p1222_p3 = scmp.lt.s32.totalorder %s1700_s13, %s1216_s25 }
  0x7b   : > { %p1223_p4 = por %p1222_p3, %p1221_p2 }
  0x7d   : > { %p1224_p5 = pnand %p1223_p4, %p1217_p1 }
  0x7f   : > { %1227 = shalt.err (!%p1224_p5)  }
  0x80   : > { %278 = dma.hbm_to_vmem [thread:$0]  %s265_s20, 16, %s276_s17, [#allocation5 + $0x1] }
  0x81   : > { %s1735_s15 = sld [smem:[#allocation8 + %s279_s14]]  ;;  %s1565_s26 = smov [#allocation3 + $0x2]  }
  0x82   : > { %s308_s28 = sshll.u32 %s1565_s26, 4  ;;  %s312_s16 = sadd.s32 3, %s1643_s19  ;;  %s1739_s28 = int_to_ptr.vmem [resolvable:$true] %s308_s28 }
  0x83   : > { %s960_s21 = sshll.u32 %s1721_s10, 4  ;;  %s1744_s25 = sld [smem:[#allocation7 + %s312_s16]] }
  0x84   : > { %s283_s12 = scalar_lea.hbm %s1980_s2, %s960_s21 }
  0x85   : > { %s1228_s9 = scalar_lea.hbm %s283_s12, 16  ;;  %p1231_p7 = scmp.lt.u32.totalorder %s283_s12, %s1980_s2 }
  0x86   : > { %p1229_p6 = scmp.ne.s32.totalorder %s283_s12, %s1228_s9  ;;  %p1232_p8 = scmp.lt.u32.totalorder %s1669_s0, %s1228_s9 }
  0x87   : > { %p1234_p10 = scmp.lt.u32.totalorder %s1228_s9, %s283_s12 }
  0x88   : > { %p1233_p9 = por %p1232_p8, %p1231_p7 }
  0x8a   : > { %p1235_p11 = por %p1234_p10, %p1233_p9 }
  0x8c   : > { %p1236_p12 = pnand %p1235_p11, %p1229_p6 }
  0x8e   : > { %1239 = shalt.err (!%p1236_p12)  }
  0x8f   : > { %s1240_s14 = scalar_lea.vmem %s1727_s11, 16  ;;  %p1245_p0 = scmp.lt.s32.totalorder %s1727_s11, %s1649_s22 }
  0x90   : > { %p1241_p13 = scmp.ne.s32.totalorder %s1727_s11, %s1240_s14  ;;  %p1246_p1 = scmp.lt.s32.totalorder %s1678_s24, %s1240_s14 }
  0x92   : > { %p1247_p2 = por %p1246_p1, %p1245_p0 }
  0x94   : > { %p1248_p3 = pnand %p1247_p2, %p1241_p13 }
  0x96   : > { %1251 = shalt.err (!%p1248_p3)  }
  0x97   : > { %296 = dma.hbm_to_vmem [thread:$0]  %s283_s12, 16, %s1727_s11, [#allocation4 + $0x2] }
  0x98   : > { %s1756_s9 = sld [smem:[#allocation8 + %s312_s16]]  ;;  %s961_s10 = sshll.u32 %s1735_s15, 4 }
  0x99   : > { %s1566_s26 = smov [#allocation2 + $0x3]   ;;  %s298_s17 = scalar_lea.hbm %s1981_s3, %s961_s10 }
  0x9a   : > { %s326_s21 = sshll.u32 %s1566_s26, 4  ;;  %s1252_s20 = scalar_lea.hbm %s298_s17, 16  ;;  %s1762_s21 = int_to_ptr.vmem [resolvable:$true] %s326_s21 }
  0x9b   : > { %p1253_p4 = scmp.ne.s32.totalorder %s298_s17, %s1252_s20  ;;  %p1255_p5 = scmp.lt.u32.totalorder %s298_s17, %s1981_s3 }
  0x9c   : > { %p1256_p6 = scmp.lt.u32.totalorder %s1691_s18, %s1252_s20  ;;  %p1258_p8 = scmp.lt.u32.totalorder %s1252_s20, %s298_s17 }
  0x9e   : > { %p1257_p7 = por %p1256_p6, %p1255_p5 }
  0xa0   : > { %p1259_p9 = por %p1258_p8, %p1257_p7 }
  0xa2   : > { %p1260_p10 = pnand %p1259_p9, %p1253_p4 }
  0xa4   : > { %1263 = shalt.err (!%p1260_p10)  }
  0xa5   : > { %s1264_s11 = scalar_lea.vmem %s1739_s28, 16  ;;  %p1269_p12 = scmp.lt.s32.totalorder %s1739_s28, %s1657_s29 }
  0xa6   : > { %p1265_p11 = scmp.ne.s32.totalorder %s1739_s28, %s1264_s11  ;;  %p1270_p13 = scmp.lt.s32.totalorder %s1700_s13, %s1264_s11 }
  0xa8   : > { %p1271_p0 = por %p1270_p13, %p1269_p12 }
  0xaa   : > { %p1272_p1 = pnand %p1271_p0, %p1265_p11 }
  0xac   : > { %1275 = shalt.err (!%p1272_p1)  }
  0xad   : > { %311 = dma.hbm_to_vmem [thread:$0]  %s298_s17, 16, %s1739_s28, [#allocation5 + $0x2] }
  0xae   : > { %s962_s1 = sshll.u32 %s1744_s25, 4  ;;  %s1567_s10 = smov [#allocation3 + $0x3]  }
  0xaf   : > { %s316_s12 = scalar_lea.hbm %s1980_s2, %s962_s1  ;;  %s341_s26 = sshll.u32 %s1567_s10, 4  ;;  %s342_s26 = int_to_ptr.vmem [resolvable:$true] %s341_s26 }
  0xb0   : > { %s1276_s23 = scalar_lea.hbm %s316_s12, 16  ;;  %p1279_p3 = scmp.lt.u32.totalorder %s316_s12, %s1980_s2 }
  0xb1   : > { %p1277_p2 = scmp.ne.s32.totalorder %s316_s12, %s1276_s23  ;;  %p1280_p4 = scmp.lt.u32.totalorder %s1669_s0, %s1276_s23 }
  0xb2   : > { %p1282_p6 = scmp.lt.u32.totalorder %s1276_s23, %s316_s12 }
  0xb3   : > { %p1281_p5 = por %p1280_p4, %p1279_p3 }
  0xb5   : > { %p1283_p7 = por %p1282_p6, %p1281_p5 }
  0xb7   : > { %p1284_p8 = pnand %p1283_p7, %p1277_p2 }
  0xb9   : > { %1287 = shalt.err (!%p1284_p8)  }
  0xba   : > { %s1288_s28 = scalar_lea.vmem %s1762_s21, 16  ;;  %p1293_p10 = scmp.lt.s32.totalorder %s1762_s21, %s1649_s22 }
  0xbb   : > { %p1289_p9 = scmp.ne.s32.totalorder %s1762_s21, %s1288_s28  ;;  %p1294_p11 = scmp.lt.s32.totalorder %s1678_s24, %s1288_s28 }
  0xbd   : > { %p1295_p12 = por %p1294_p11, %p1293_p10 }
  0xbf   : > { %p1296_p13 = pnand %p1295_p12, %p1289_p9 }
  0xc1   : > { %1299 = shalt.err (!%p1296_p13)  }
  0xc2   : > { %329 = dma.hbm_to_vmem [thread:$0]  %s316_s12, 16, %s1762_s21, [#allocation4 + $0x3] }
  0xc3   : > { %s963_s25 = sshll.u32 %s1756_s9, 4  ;;  %s345_s1 = sadd.s32 4, %s1643_s19 }
  0xc4   : > { %s331_s11 = scalar_lea.hbm %s1981_s3, %s963_s25 }
  0xc5   : > { %s1300_s15 = scalar_lea.hbm %s331_s11, 16  ;;  %p1303_p1 = scmp.lt.u32.totalorder %s331_s11, %s1981_s3 }
  0xc6   : > { %p1301_p0 = scmp.ne.s32.totalorder %s331_s11, %s1300_s15  ;;  %p1304_p2 = scmp.lt.u32.totalorder %s1691_s18, %s1300_s15 }
  0xc7   : > { %p1306_p4 = scmp.lt.u32.totalorder %s1300_s15, %s331_s11 }
  0xc8   : > { %p1305_p3 = por %p1304_p2, %p1303_p1 }
  0xca   : > { %p1307_p5 = por %p1306_p4, %p1305_p3 }
  0xcc   : > { %p1308_p6 = pnand %p1307_p5, %p1301_p0 }
  0xce   : > { %1311 = shalt.err (!%p1308_p6)  }
  0xcf   : > { %s1312_s21 = scalar_lea.vmem %s342_s26, 16  ;;  %p1317_p8 = scmp.lt.s32.totalorder %s342_s26, %s1657_s29 }
  0xd0   : > { %p1313_p7 = scmp.ne.s32.totalorder %s342_s26, %s1312_s21  ;;  %p1318_p9 = scmp.lt.s32.totalorder %s1700_s13, %s1312_s21 }
  0xd2   : > { %p1319_p10 = por %p1318_p9, %p1317_p8 }
  0xd4   : > { %p1320_p11 = pnand %p1319_p10, %p1313_p7 }
  0xd6   : > { %1323 = shalt.err (!%p1320_p11)  }
  0xd7   : > { %344 = dma.hbm_to_vmem [thread:$0]  %s331_s11, 16, %s342_s26, [#allocation5 + $0x3] }
  0xd8   : > { %s346_s9 = sld [smem:[#allocation7 + %s345_s1]]  ;;  %s1568_s12 = smov [#allocation2 + $0x4]  }
  0xd9   : > { %s359_s23 = sshll.u32 %s1568_s12, 4  ;;  %s1799_s30 = sld [smem:[#allocation8 + %s345_s1]]  ;;  %s360_s23 = int_to_ptr.vmem [resolvable:$true] %s359_s23 }
  0xda   : > { %s1569_s20 = smov [#allocation3 + $0x4]   ;;  %s378_s25 = sadd.s32 5, %s1643_s19 }
  0xdb   : > { %s374_s28 = sshll.u32 %s1569_s20, 4  ;;  %s1804_s17 = sld [smem:[#allocation7 + %s378_s25]]  ;;  %s1802_s28 = int_to_ptr.vmem [resolvable:$true] %s374_s28 }
  0xdc   : > { %s1806_s14 = sld [smem:[#allocation8 + %s378_s25]]  ;;  %s1570_s26 = smov [#allocation2 + $0x5]  }
  0xdd   : > { %s392_s11 = sshll.u32 %s1570_s26, 4  ;;  %s1821_s11 = int_to_ptr.vmem [resolvable:$true] %s392_s11 }
  0xde   : > { %s964_s15 = sshll.u32 %s346_s9, 4 }
  0xdf   : > { %s349_s1 = scalar_lea.hbm %s1980_s2, %s964_s15  ;;  %s965_s21 = sshll.u32 %s1799_s30, 4 }
  0xe0   : > { %s1324_s12 = scalar_lea.hbm %s349_s1, 16  ;;  %p1327_p13 = scmp.lt.u32.totalorder %s349_s1, %s1980_s2 }
  0xe1   : > { %p1325_p12 = scmp.ne.s32.totalorder %s349_s1, %s1324_s12  ;;  %p1328_p0 = scmp.lt.u32.totalorder %s1669_s0, %s1324_s12 }
  0xe2   : > { %p1330_p2 = scmp.lt.u32.totalorder %s1324_s12, %s349_s1 }
  0xe3   : > { %p1329_p1 = por %p1328_p0, %p1327_p13 }
  0xe5   : > { %p1331_p3 = por %p1330_p2, %p1329_p1 }
  0xe7   : > { %p1332_p4 = pnand %p1331_p3, %p1325_p12 }
  0xe9   : > { %1335 = shalt.err (!%p1332_p4)  }
  0xea   : > { %s1336_s9 = scalar_lea.vmem %s360_s23, 16  ;;  %p1341_p6 = scmp.lt.s32.totalorder %s360_s23, %s1649_s22 }
  0xeb   : > { %p1337_p5 = scmp.ne.s32.totalorder %s360_s23, %s1336_s9  ;;  %p1342_p7 = scmp.lt.s32.totalorder %s1678_s24, %s1336_s9 }
  0xed   : > { %p1343_p8 = por %p1342_p7, %p1341_p6 }
  0xef   : > { %p1344_p9 = pnand %p1343_p8, %p1337_p5 }
  0xf1   : > { %1347 = shalt.err (!%p1344_p9)  }
  0xf2   : > { %362 = dma.hbm_to_vmem [thread:$0]  %s349_s1, 16, %s360_s23, [#allocation4 + $0x4] }
  0xf3   : > { %s364_s6 = scalar_lea.hbm %s1981_s3, %s965_s21 }
  0xf4   : > { %s1348_s8 = scalar_lea.hbm %s364_s6, 16  ;;  %p1351_p11 = scmp.lt.u32.totalorder %s364_s6, %s1981_s3 }
  0xf5   : > { %p1349_p10 = scmp.ne.s32.totalorder %s364_s6, %s1348_s8  ;;  %p1352_p12 = scmp.lt.u32.totalorder %s1691_s18, %s1348_s8 }
  0xf6   : > { %p1354_p0 = scmp.lt.u32.totalorder %s1348_s8, %s364_s6 }
  0xf7   : > { %p1353_p13 = por %p1352_p12, %p1351_p11 }
  0xf9   : > { %p1355_p1 = por %p1354_p0, %p1353_p13 }
  0xfb   : > { %p1356_p2 = pnand %p1355_p1, %p1349_p10 }
  0xfd   : > { %1359 = shalt.err (!%p1356_p2)  }
  0xfe   : > { %s1360_s23 = scalar_lea.vmem %s1802_s28, 16  ;;  %p1365_p4 = scmp.lt.s32.totalorder %s1802_s28, %s1657_s29 }
  0xff   : > { %p1361_p3 = scmp.ne.s32.totalorder %s1802_s28, %s1360_s23  ;;  %p1366_p5 = scmp.lt.s32.totalorder %s1700_s13, %s1360_s23 }
 0x101   : > { %p1367_p6 = por %p1366_p5, %p1365_p4 }
 0x103   : > { %p1368_p7 = pnand %p1367_p6, %p1361_p3 }
 0x105   : > { %1371 = shalt.err (!%p1368_p7)  }
 0x106   : > { %377 = dma.hbm_to_vmem [thread:$0]  %s364_s6, 16, %s1802_s28, [#allocation5 + $0x4] }
 0x107   : > { %s966_s26 = sshll.u32 %s1804_s17, 4  ;;  %s967_s16 = sshll.u32 %s1806_s14, 4 }
 0x108   : > { %s382_s21 = scalar_lea.hbm %s1980_s2, %s966_s26  ;;  %s1841_s30 = scalar_lea.hbm %s1981_s3, %s967_s16 }
 0x109   : > { %s1372_s20 = scalar_lea.hbm %s382_s21, 16  ;;  %p1375_p9 = scmp.lt.u32.totalorder %s382_s21, %s1980_s2 }
 0x10a   : > { %p1373_p8 = scmp.ne.s32.totalorder %s382_s21, %s1372_s20  ;;  %p1376_p10 = scmp.lt.u32.totalorder %s1669_s0, %s1372_s20 }
 0x10b   : > { %p1378_p12 = scmp.lt.u32.totalorder %s1372_s20, %s382_s21 }
 0x10c   : > { %p1377_p11 = por %p1376_p10, %p1375_p9 }
 0x10e   : > { %p1379_p13 = por %p1378_p12, %p1377_p11 }
 0x110   : > { %p1380_p0 = pnand %p1379_p13, %p1373_p8 }
 0x112   : > { %1383 = shalt.err (!%p1380_p0)  }
 0x113   : > { %s1384_s28 = scalar_lea.vmem %s1821_s11, 16  ;;  %p1389_p2 = scmp.lt.s32.totalorder %s1821_s11, %s1649_s22 }
 0x114   : > { %p1385_p1 = scmp.ne.s32.totalorder %s1821_s11, %s1384_s28  ;;  %p1390_p3 = scmp.lt.s32.totalorder %s1678_s24, %s1384_s28 }
 0x116   : > { %p1391_p4 = por %p1390_p3, %p1389_p2 }
 0x118   : > { %p1392_p5 = pnand %p1391_p4, %p1385_p1 }
 0x11a   : > { %1395 = shalt.err (!%p1392_p5)  }
 0x11b   : > { %395 = dma.hbm_to_vmem [thread:$0]  %s382_s21, 16, %s1821_s11, [#allocation4 + $0x5] }
 0x11c   : > { %s411_s17 = sadd.s32 6, %s1643_s19  ;;  %s1571_s14 = smov [#allocation3 + $0x5]  }
 0x11d   : > { %s407_s6 = sshll.u32 %s1571_s14, 4  ;;  %s1854_s15 = sld [smem:[#allocation7 + %s411_s17]]  ;;  %s408_s6 = int_to_ptr.vmem [resolvable:$true] %s407_s6 }
 0x11e   : > { %s1396_s23 = scalar_lea.hbm %s1841_s30, 16  ;;  %p1399_p7 = scmp.lt.u32.totalorder %s1841_s30, %s1981_s3 }
 0x11f   : > { %p1397_p6 = scmp.ne.s32.totalorder %s1841_s30, %s1396_s23  ;;  %p1400_p8 = scmp.lt.u32.totalorder %s1691_s18, %s1396_s23 }
 0x120   : > { %p1402_p10 = scmp.lt.u32.totalorder %s1396_s23, %s1841_s30 }
 0x121   : > { %p1401_p9 = por %p1400_p8, %p1399_p7 }
 0x123   : > { %p1403_p11 = por %p1402_p10, %p1401_p9 }
 0x125   : > { %p1404_p12 = pnand %p1403_p11, %p1397_p6 }
 0x127   : > { %1407 = shalt.err (!%p1404_p12)  }
 0x128   : > { %s1408_s10 = scalar_lea.vmem %s408_s6, 16  ;;  %p1413_p0 = scmp.lt.s32.totalorder %s408_s6, %s1657_s29 }
 0x129   : > { %p1409_p13 = scmp.ne.s32.totalorder %s408_s6, %s1408_s10  ;;  %p1414_p1 = scmp.lt.s32.totalorder %s1700_s13, %s1408_s10 }
 0x12b   : > { %p1415_p2 = por %p1414_p1, %p1413_p0 }
 0x12d   : > { %p1416_p3 = pnand %p1415_p2, %p1409_p13 }
 0x12f   : > { %1419 = shalt.err (!%p1416_p3)  }
 0x130   : > { %410 = dma.hbm_to_vmem [thread:$0]  %s1841_s30, 16, %s408_s6, [#allocation5 + $0x5] }
 0x131   : > { %s1572_s11 = smov [#allocation2 + $0x6]   ;;  %s413_s21 = sld [smem:[#allocation8 + %s411_s17]] }
 0x132   : > { %s425_s1 = sshll.u32 %s1572_s11, 4  ;;  %s1573_s12 = smov [#allocation3 + $0x6]   ;;  %s426_s1 = int_to_ptr.vmem [resolvable:$true] %s425_s1 }
 0x133   : > { %s440_s9 = sshll.u32 %s1573_s12, 4  ;;  %s444_s20 = sadd.s32 7, %s1643_s19  ;;  %s1869_s9 = int_to_ptr.vmem [resolvable:$true] %s440_s9 }
 0x134   : > { %s968_s8 = sshll.u32 %s1854_s15, 4  ;;  %s1876_s23 = sld [smem:[#allocation7 + %s444_s20]] }
 0x135   : > { %s415_s14 = scalar_lea.hbm %s1980_s2, %s968_s8 }
 0x136   : > { %s1420_s26 = scalar_lea.hbm %s415_s14, 16  ;;  %p1423_p5 = scmp.lt.u32.totalorder %s415_s14, %s1980_s2 }
 0x137   : > { %p1421_p4 = scmp.ne.s32.totalorder %s415_s14, %s1420_s26  ;;  %p1424_p6 = scmp.lt.u32.totalorder %s1669_s0, %s1420_s26 }
 0x138   : > { %p1426_p8 = scmp.lt.u32.totalorder %s1420_s26, %s415_s14 }
 0x139   : > { %p1425_p7 = por %p1424_p6, %p1423_p5 }
 0x13b   : > { %p1427_p9 = por %p1426_p8, %p1425_p7 }
 0x13d   : > { %p1428_p10 = pnand %p1427_p9, %p1421_p4 }
 0x13f   : > { %1431 = shalt.err (!%p1428_p10)  }
 0x140   : > { %s1432_s17 = scalar_lea.vmem %s426_s1, 16  ;;  %p1437_p12 = scmp.lt.s32.totalorder %s426_s1, %s1649_s22 }
 0x141   : > { %p1433_p11 = scmp.ne.s32.totalorder %s426_s1, %s1432_s17  ;;  %p1438_p13 = scmp.lt.s32.totalorder %s1678_s24, %s1432_s17 }
 0x143   : > { %p1439_p0 = por %p1438_p13, %p1437_p12 }
 0x145   : > { %p1440_p1 = pnand %p1439_p0, %p1433_p11 }
 0x147   : > { %1443 = shalt.err (!%p1440_p1)  }
 0x148   : > { %428 = dma.hbm_to_vmem [thread:$0]  %s415_s14, 16, %s426_s1, [#allocation4 + $0x6] }
 0x149   : > { %s969_s15 = sshll.u32 %s413_s21, 4  ;;  %s1574_s12 = smov [#allocation2 + $0x7]  }
 0x14a   : > { %s430_s11 = scalar_lea.hbm %s1981_s3, %s969_s15  ;;  %s458_s8 = sshll.u32 %s1574_s12, 4  ;;  %s459_s8 = int_to_ptr.vmem [resolvable:$true] %s458_s8 }
 0x14b   : > { %s1444_s25 = scalar_lea.hbm %s430_s11, 16  ;;  %p1447_p3 = scmp.lt.u32.totalorder %s430_s11, %s1981_s3 }
 0x14c   : > { %p1445_p2 = scmp.ne.s32.totalorder %s430_s11, %s1444_s25  ;;  %p1448_p4 = scmp.lt.u32.totalorder %s1691_s18, %s1444_s25 }
 0x14d   : > { %p1450_p6 = scmp.lt.u32.totalorder %s1444_s25, %s430_s11 }
 0x14e   : > { %p1449_p5 = por %p1448_p4, %p1447_p3 }
 0x150   : > { %p1451_p7 = por %p1450_p6, %p1449_p5 }
 0x152   : > { %p1452_p8 = pnand %p1451_p7, %p1445_p2 }
 0x154   : > { %1455 = shalt.err (!%p1452_p8)  }
 0x155   : > { %s1456_s1 = scalar_lea.vmem %s1869_s9, 16  ;;  %p1461_p10 = scmp.lt.s32.totalorder %s1869_s9, %s1657_s29 }
 0x156   : > { %p1457_p9 = scmp.ne.s32.totalorder %s1869_s9, %s1456_s1  ;;  %p1462_p11 = scmp.lt.s32.totalorder %s1700_s13, %s1456_s1 }
 0x158   : > { %p1463_p12 = por %p1462_p11, %p1461_p10 }
 0x15a   : > { %p1464_p13 = pnand %p1463_p12, %p1457_p9 }
 0x15c   : > { %1467 = shalt.err (!%p1464_p13)  }
 0x15d   : > { %443 = dma.hbm_to_vmem [thread:$0]  %s430_s11, 16, %s1869_s9, [#allocation5 + $0x6] }
 0x15e   : > { %s446_s21 = sld [smem:[#allocation8 + %s444_s20]]  ;;  %s970_s14 = sshll.u32 %s1876_s23, 4 }
 0x15f   : > { %s448_s17 = scalar_lea.hbm %s1980_s2, %s970_s14  ;;  %s1575_s15 = smov [#allocation3 + $0x7]  }
 0x160   : > { %s473_s16 = sshll.u32 %s1575_s15, 4  ;;  %s1468_s10 = scalar_lea.hbm %s448_s17, 16  ;;  %s474_s16 = int_to_ptr.vmem [resolvable:$true] %s473_s16 }
 0x161   : > { %p1469_p0 = scmp.ne.s32.totalorder %s448_s17, %s1468_s10  ;;  %p1471_p1 = scmp.lt.u32.totalorder %s448_s17, %s1980_s2 }
 0x162   : > { %p1472_p2 = scmp.lt.u32.totalorder %s1669_s0, %s1468_s10  ;;  %p1474_p4 = scmp.lt.u32.totalorder %s1468_s10, %s448_s17 }
 0x164   : > { %p1473_p3 = por %p1472_p2, %p1471_p1 }
 0x166   : > { %p1475_p5 = por %p1474_p4, %p1473_p3 }
 0x168   : > { %p1476_p6 = pnand %p1475_p5, %p1469_p0 }
 0x16a   : > { %1479 = shalt.err (!%p1476_p6)  }
 0x16b   : > { %s1480_s19 = scalar_lea.vmem %s459_s8, 16  ;;  %p1485_p8 = scmp.lt.s32.totalorder %s459_s8, %s1649_s22 }
 0x16c   : > { %p1481_p7 = scmp.ne.s32.totalorder %s459_s8, %s1480_s19  ;;  %p1486_p9 = scmp.lt.s32.totalorder %s1678_s24, %s1480_s19 }
 0x16e   : > { %p1487_p10 = por %p1486_p9, %p1485_p8 }
 0x170   : > { %p1488_p11 = pnand %p1487_p10, %p1481_p7 }
 0x172   : > { %1491 = shalt.err (!%p1488_p11)  }
 0x173   : > { %461 = dma.hbm_to_vmem [thread:$0]  %s448_s17, 16, %s459_s8, [#allocation4 + $0x7] }
 0x174   : > { %s971_s9 = sshll.u32 %s446_s21, 4 }
 0x175   : > { %s463_s23 = scalar_lea.hbm %s1981_s3, %s971_s9 }
 0x176   : > { %s1492_s11 = scalar_lea.hbm %s463_s23, 16  ;;  %p1495_p13 = scmp.lt.u32.totalorder %s463_s23, %s1981_s3 }
 0x177   : > { %p1493_p12 = scmp.ne.s32.totalorder %s463_s23, %s1492_s11  ;;  %p1496_p0 = scmp.lt.u32.totalorder %s1691_s18, %s1492_s11 }
 0x178   : > { %p1498_p2 = scmp.lt.u32.totalorder %s1492_s11, %s463_s23 }
 0x179   : > { %p1497_p1 = por %p1496_p0, %p1495_p13 }
 0x17b   : > { %p1499_p3 = por %p1498_p2, %p1497_p1 }
 0x17d   : > { %p1500_p4 = pnand %p1499_p3, %p1493_p12 }
 0x17f   : > { %1503 = shalt.err (!%p1500_p4)  }
 0x180   : > { %s1504_s22 = scalar_lea.vmem %s474_s16, 16  ;;  %p1509_p6 = scmp.lt.s32.totalorder %s474_s16, %s1657_s29 }
 0x181   : > { %p1505_p5 = scmp.ne.s32.totalorder %s474_s16, %s1504_s22  ;;  %p1510_p7 = scmp.lt.s32.totalorder %s1700_s13, %s1504_s22 }
 0x183   : > { %p1511_p8 = por %p1510_p7, %p1509_p6 }
 0x185   : > { %p1512_p9 = pnand %p1511_p8, %p1505_p5 }
 0x187   : > { %1515 = shalt.err (!%p1512_p9)  }
 0x188   : > { %476 = dma.hbm_to_vmem [thread:$0]  %s463_s23, 16, %s474_s16, [#allocation5 + $0x7] }
 0x189   : > { %1522 = dma.done.wait [#allocation4], 16 }
 0x18a   : > { %1523 = vsyncadd [#allocation4], 4294967280 }
 0x18b   : > { %1524 = dma.done.wait [#allocation5], 16 }
 0x18c   : > { %1525 = vsyncadd [#allocation5], 4294967280 }
 0x18d   : > { %1526 = dma.done.wait [#allocation4 + $0x1], 16 }
 0x18e   : > { %1527 = vsyncadd [#allocation4 + $0x1], 4294967280 }
 0x18f   : > { %1528 = dma.done.wait [#allocation5 + $0x1], 16 }
 0x190   : > { %1529 = vsyncadd [#allocation5 + $0x1], 4294967280 }
 0x191   : > { %1530 = dma.done.wait [#allocation4 + $0x2], 16 }
 0x192   : > { %1531 = vsyncadd [#allocation4 + $0x2], 4294967280 }
 0x193   : > { %1532 = dma.done.wait [#allocation5 + $0x2], 16 }
 0x194   : > { %1533 = vsyncadd [#allocation5 + $0x2], 4294967280 }
 0x195   : > { %1534 = dma.done.wait [#allocation4 + $0x3], 16 }
 0x196   : > { %1535 = vsyncadd [#allocation4 + $0x3], 4294967280 }
 0x197   : > { %1536 = dma.done.wait [#allocation5 + $0x3], 16 }
 0x198   : > { %1537 = vsyncadd [#allocation5 + $0x3], 4294967280 }
 0x199   : > { %1538 = dma.done.wait [#allocation4 + $0x4], 16 }
 0x19a   : > { %1539 = vsyncadd [#allocation4 + $0x4], 4294967280 }
 0x19b   : > { %1540 = dma.done.wait [#allocation5 + $0x4], 16 }
 0x19c   : > { %1541 = vsyncadd [#allocation5 + $0x4], 4294967280 }
 0x19d   : > { %1542 = dma.done.wait [#allocation4 + $0x5], 16 }
 0x19e   : > { %1543 = vsyncadd [#allocation4 + $0x5], 4294967280 }
 0x19f   : > { %1544 = dma.done.wait [#allocation5 + $0x5], 16 }
 0x1a0   : > { %1545 = vsyncadd [#allocation5 + $0x5], 4294967280 }
 0x1a1   : > { %1546 = dma.done.wait [#allocation4 + $0x6], 16 }
 0x1a2   : > { %1547 = vsyncadd [#allocation4 + $0x6], 4294967280 }
 0x1a3   : > { %1548 = dma.done.wait [#allocation5 + $0x6], 16 }
 0x1a4   : > { %1549 = vsyncadd [#allocation5 + $0x6], 4294967280 }
 0x1a5   : > { %1550 = dma.done.wait [#allocation4 + $0x7], 16 }
 0x1a6   : > { %1551 = vsyncadd [#allocation4 + $0x7], 4294967280 }
 0x1a7   : > { %1552 = dma.done.wait [#allocation5 + $0x7], 16 }
 0x1a8   : > { %1553 = vsyncadd [#allocation5 + $0x7], 4294967280  ;;  %v1576_v0 = vmov 0.0|0.0   ;;  %vm1577_vm0 = vmmov 0   ;;  %v1578_v1 = vmov 0.0   ;;  %v516_v2 = vld [vmem:[%s1983_s5] sm:$0xff] }
 0x1a9   : > { %1055 = vmatprep.subr.bf16.mxu1 %v1576_v0  ;;  %1022 = vmatprep.mubr.msk.f32.mxu1 %vm1577_vm0, %v1578_v1  ;;  %v517_v3 = vld [vmem:[%s1983_s5 + $0x8] sm:$0xff]  ;;  %v518_v4 = vld [vmem:[%s1983_s5 + $0x10] sm:$0xff]  ;;  %v519_v6 = vld [vmem:[%s1983_s5 + $0x18] sm:$0xff]  ;;  %vm520_vm1 = vcmask 261120   ;;  %s1995_s6 = sld [smem:[#allocation61_spill]]  ;;  %vm691_vm2 = vcmask 523264  }
 0x1aa   : > { %1067 = vmatprep.subr.bf16.mxu0 %v1576_v0  ;;  %1052 = vmatprep.mubr.msk.f32.mxu0 %vm1577_vm0, %v1578_v1  ;;  %v1056_v5 = vpack.c.bf16 %v517_v3, %v516_v2  ;;  %v1059_v7 = vpack.c.bf16 %v519_v6, %v518_v4  ;;  %v512_v8 = vld [vmem:[%s1982_s4] sm:$0xff]  ;;  %v513_v9 = vld [vmem:[%s1982_s4 + $0x8] sm:$0xff]  ;;  %v514_v12 = vld [vmem:[%s1982_s4 + $0x10] sm:$0xff]  ;;  %s1996_s16 = sld [smem:[#allocation62_spill]]  ;;  %vm765_vm3 = vcmask 64512  }
 0x1ab   : > { %v511_v10 = vld [vmem:[#allocation3] sm:$0xff]  ;;  %v1062_v11 = vpack.c.bf16 %v513_v9, %v512_v8  ;;  %v515_v13 = vld [vmem:[%s1982_s4 + $0x18] sm:$0xff]  ;;  %v510_v15 = vld [vmem:[#allocation2] sm:$0xff] }
 0x1ac   : > { %1057 = vmatpush3.bf16.msra.mxu1 %v1056_v5  ;;  %v1065_v14 = vpack.c.bf16 %v515_v13, %v514_v12  ;;  %v676_v16 = vld [vmem:[%s1985_s7] sm:$0xff]  ;;  %v677_v17 = vld [vmem:[%s1985_s7 + $0x8] sm:$0xff]  ;;  %v678_v19 = vld [vmem:[%s1985_s7 + $0x10] sm:$0xff] }
 0x1ad   : > { %1058 = vmatprep.subr.bf16.mxu1 %v1576_v0  ;;  %v1068_v18 = vpack.c.bf16 %v677_v17, %v676_v16  ;;  %v679_v20 = vld [vmem:[%s1985_s7 + $0x18] sm:$0xff]  ;;  %v680_v22 = vld [vmem:[%s1985_s7 + $0x20] sm:$0xff]  ;;  %v681_v23 = vld [vmem:[%s1985_s7 + $0x28] sm:$0xff] }
 0x1ae   : > { %v1071_v21 = vpack.c.bf16 %v679_v20, %v678_v19  ;;  %v1074_v24 = vpack.c.bf16 %v681_v23, %v680_v22  ;;  %v682_v25 = vld [vmem:[%s1985_s7 + $0x30] sm:$0xff]  ;;  %v683_v26 = vld [vmem:[%s1985_s7 + $0x38] sm:$0xff] }
 0x1af   : > { %1069 = vmatpush3.bf16.msra.mxu0 %v1068_v18  ;;  %v1077_v27 = vpack.c.bf16 %v683_v26, %v682_v25  ;;  %v974_v31 = vld [vmem:[%s1995_s6] ss:$0 sm:$0xff] }
 0x1b0   : > { %1060 = vmatpush3.bf16.msra.mxu1 %v1059_v7  ;;  %1070 = vmatprep.subr.bf16.mxu0 %v1576_v0  ;;  %v975_v36 = vld [vmem:[%s1996_s16] ss:$0 sm:$0xff] }
 0x1b1   : > { %1061 = vmatprep.subr.bf16.mxu1 %v1576_v0 }
 0x1b3   : > { %1023 = vmatmul.mubr.msk.f32.vlgmr.msra.gmra.mrb[0].mxu1 %vm520_vm1, %v511_v10  ;;  %1072 = vmatpush3.bf16.msra.mxu0 %v1071_v21 }
 0x1b4   : > { %1063 = vmatpush3.bf16.msra.mxu1 %v1062_v11  ;;  %1033 = vmatprep.mubr.msk.f32.mxu1 %vm1577_vm0, %v1578_v1 }
 0x1b5   : > { %1064 = vmatprep.subr.bf16.mxu1 %v1576_v0  ;;  %1073 = vmatprep.subr.bf16.mxu0 %v1576_v0 }
 0x1b7   : > { %1075 = vmatpush3.bf16.msra.mxu0 %v1074_v24 }
 0x1b8   : > { %1066 = vmatpush3.bf16.msra.mxu1 %v1065_v14  ;;  %1076 = vmatprep.subr.bf16.mxu0 %v1576_v0 }
 0x1bb   : > { %1034 = vmatmul.mubr.msk.f32.vlgmr.msra.gmra.mrb[2].mxu1 %vm520_vm1, %v510_v15  ;;  %1078 = vmatpush3.bf16.msra.mxu0 %v1077_v27 }
 0x286   : > { %v590_v28 = vpop.f32.mrb[0].mxu1 }
 0x287   : > { %v1024_v29 = vpop.f32.mrb[1].mxu1 }
 0x28e   : > { %v663_v30 = vpop.f32.mrb[2].mxu1 }
 0x28f   : > { %v664_v32 = vadd.f32 %v663_v30, %v590_v28  ;;  %v1035_v33 = vpop.f32.mrb[3].mxu1 }
 0x291   : > { %v674_v34 = vadd.f32 %v974_v31, %v664_v32 }
 0x293   : > { %v675_v35 = vmax.f32 %v674_v34, 0.0 }
 0x295   : > { %1053 = vmatmul.mubr.msk.f32.vlgmr.msra.gmra.mrb[0].mxu0 %vm691_vm2, %v675_v35 }
 0x368   : > { %v761_v37 = vpop.f32.mrb[0].mxu0 }
 0x369   : > { %v762_v38 = vadd.f32 %v975_v36, %v761_v37  ;;  %v1054_v39 = vpop.f32.mrb[1].mxu0 }
 0x36b   : > { %766 = vst.msk [vmem:[%s1654_s27] sm:$0xff] %vm765_vm3, %v762_v38 }
 0x36c PF: > { %s1997_s10 = sld [smem:[#allocation60_spill]] }
 0x372   : > { %s29_s1 = sadd.s32 1, %s1997_s10  }
 0x373   : > { %p26_p10 = scmp.ge.s32.totalorder %s29_s1, 4  }
 0x375   :  { %28 = sbr.rel (!%p26_p10) target bundleno = 28 (0x1c), region = 189 }
 0x37c   :  { %786 = vsyncmov [#allocation4] }
 0x37f   :  { %s787_s12 = vpop.sfrf %786 }
 0x380   :  { %p979_p11 = scmp.ne.s32.totalorder %s787_s12, 0 }
 0x382   :  { %791 = shalt.err (%p979_p11)  }
 0x383   :  { %793 = vsyncmov [#allocation4 + $0x1] }
 0x386   :  { %s794_s25 = vpop.sfrf %793 }
 0x387   :  { %p980_p12 = scmp.ne.s32.totalorder %s794_s25, 0 }
 0x389   :  { %798 = shalt.err (%p980_p12)  }
 0x38a   :  { %800 = vsyncmov [#allocation4 + $0x2] }
 0x38d   :  { %s801_s19 = vpop.sfrf %800 }
 0x38e   :  { %p981_p13 = scmp.ne.s32.totalorder %s801_s19, 0 }
 0x390   :  { %805 = shalt.err (%p981_p13)  }
 0x391   :  { %807 = vsyncmov [#allocation4 + $0x3] }
 0x394   :  { %s808_s27 = vpop.sfrf %807 }
 0x395   :  { %p982_p0 = scmp.ne.s32.totalorder %s808_s27, 0 }
 0x397   :  { %812 = shalt.err (%p982_p0)  }
 0x398   :  { %814 = vsyncmov [#allocation4 + $0x4] }
 0x39b   :  { %s815_s9 = vpop.sfrf %814 }
 0x39c   :  { %p983_p1 = scmp.ne.s32.totalorder %s815_s9, 0 }
 0x39e   :  { %819 = shalt.err (%p983_p1)  }
 0x39f   :  { %821 = vsyncmov [#allocation4 + $0x5] }
 0x3a2   :  { %s822_s2 = vpop.sfrf %821 }
 0x3a3   :  { %p984_p2 = scmp.ne.s32.totalorder %s822_s2, 0 }
 0x3a5   :  { %826 = shalt.err (%p984_p2)  }
 0x3a6   :  { %828 = vsyncmov [#allocation4 + $0x6] }
 0x3a9   :  { %s829_s3 = vpop.sfrf %828 }
 0x3aa   :  { %p985_p3 = scmp.ne.s32.totalorder %s829_s3, 0 }
 0x3ac   :  { %833 = shalt.err (%p985_p3)  }
 0x3ad   :  { %835 = vsyncmov [#allocation4 + $0x7] }
 0x3b0   :  { %s836_s4 = vpop.sfrf %835 }
 0x3b1   :  { %p986_p4 = scmp.ne.s32.totalorder %s836_s4, 0 }
 0x3b3   :  { %840 = shalt.err (%p986_p4)  }
 0x3b4   :  { %841 = vsyncmov [#allocation5] }
 0x3b7   :  { %s842_s5 = vpop.sfrf %841 }
 0x3b8   :  { %p987_p5 = scmp.ne.s32.totalorder %s842_s5, 0 }
 0x3ba   :  { %846 = shalt.err (%p987_p5)  }
 0x3bb   :  { %848 = vsyncmov [#allocation5 + $0x1] }
 0x3be   :  { %s849_s7 = vpop.sfrf %848 }
 0x3bf   :  { %p988_p6 = scmp.ne.s32.totalorder %s849_s7, 0 }
 0x3c1   :  { %853 = shalt.err (%p988_p6)  }
 0x3c2   :  { %855 = vsyncmov [#allocation5 + $0x2] }
 0x3c5   :  { %s856_s20 = vpop.sfrf %855 }
 0x3c6   :  { %p989_p7 = scmp.ne.s32.totalorder %s856_s20, 0 }
 0x3c8   :  { %860 = shalt.err (%p989_p7)  }
 0x3c9   :  { %862 = vsyncmov [#allocation5 + $0x3] }
 0x3cc   :  { %s863_s0 = vpop.sfrf %862 }
 0x3cd   :  { %p990_p8 = scmp.ne.s32.totalorder %s863_s0, 0 }
 0x3cf   :  { %867 = shalt.err (%p990_p8)  }
 0x3d0   :  { %869 = vsyncmov [#allocation5 + $0x4] }
 0x3d3   :  { %s870_s23 = vpop.sfrf %869 }
 0x3d4   :  { %p991_p9 = scmp.ne.s32.totalorder %s870_s23, 0 }
 0x3d6   :  { %874 = shalt.err (%p991_p9)  }
 0x3d7   :  { %876 = vsyncmov [#allocation5 + $0x5] }
 0x3da   :  { %s877_s11 = vpop.sfrf %876 }
 0x3db   :  { %p992_p10 = scmp.ne.s32.totalorder %s877_s11, 0 }
 0x3dd   :  { %881 = shalt.err (%p992_p10)  }
 0x3de   :  { %883 = vsyncmov [#allocation5 + $0x6] }
 0x3e1   :  { %s884_s28 = vpop.sfrf %883 }
 0x3e2   :  { %p993_p11 = scmp.ne.s32.totalorder %s884_s28, 0 }
 0x3e4   :  { %888 = shalt.err (%p993_p11)  }
 0x3e5   :  { %890 = vsyncmov [#allocation5 + $0x7] }
 0x3e8   :  { %s891_s26 = vpop.sfrf %890 }
 0x3e9   :  { %p994_p12 = scmp.ne.s32.totalorder %s891_s26, 0 }
 0x3eb   :  { %895 = shalt.err (%p994_p12)  }

</bundles_post_ra>
